<compile_context>
chip_gen: v7x
topology: tpu7x:2x2x1
jax: 0.10.0
libtpu: 0.0.40
codegen_flags: <defaults>
</compile_context>

<pallas_src>
import math
import functools

import jax
import jax.numpy as jnp
from jax import lax
from jax.experimental import pallas as pl
from jax.experimental.pallas import tpu as pltpu


def _round_up(x, m):
    return (x + m - 1) // m * m


# --------------------------------------------------------------------------
# Parameter preparation (done ONCE, hoisted out of the per-call path).
# --------------------------------------------------------------------------
def prepare_params(params, *, num_heads, mxu_dtype=None):
    """Fuse Q/K/V into one head-major, lane-padded weight and fold the
    1/sqrt(head_dim) scale into the query projection.

    Input weights are [in, out] (i.e. W.T relative to torch.nn.Linear),
    biases are [1, out].

    Returns a dict with:
      wqkv : (H, nH*3*dpad)   columns per head h: [q_h | k_h | v_h], each slab
                              zero-padded from head_dim to dpad (mult. of 128)
      bqkv : (1, nH*3*dpad)
      wo   : (nH*dpad, H)     rows zero-padded to match the padded ctx layout
      bo   : (1, H)
    If mxu_dtype is given (e.g. jnp.bfloat16), the matmul weights are stored in
    that dtype (MXU-peak feeds); biases stay in their original dtype and are
    added in f32 inside the kernel.
    """
    wq, wk, wv, wo = params["wq"], params["wk"], params["wv"], params["wo"]
    bq, bk, bv, bo = params["bq"], params["bk"], params["bv"], params["bo"]
    H = wq.shape[0]
    d = H // num_heads
    dpad = _round_up(d, 128)
    scale = 1.0 / math.sqrt(d)

    def split_pad_w(w):                        # (H, nH*d) -> (H, nH, dpad)
        w = w.reshape(H, num_heads, d)
        if dpad != d:
            w = jnp.pad(w, ((0, 0), (0, 0), (0, dpad - d)))
        return w

    def split_pad_b(b):                        # (1, nH*d) -> (1, nH, dpad)
        b = b.reshape(1, num_heads, d)
        if dpad != d:
            b = jnp.pad(b, ((0, 0), (0, 0), (0, dpad - d)))
        return b

    # Fold the attention scale into the query projection (weights AND bias).
    wqkv = jnp.stack(
        [split_pad_w(wq * scale), split_pad_w(wk), split_pad_w(wv)],
        axis=2).reshape(H, num_heads * 3 * dpad)
    bqkv = jnp.stack(
        [split_pad_b(bq * scale), split_pad_b(bk), split_pad_b(bv)],
        axis=2).reshape(1, num_heads * 3 * dpad)

    wo_p = wo.reshape(num_heads, d, H)
    if dpad != d:
        wo_p = jnp.pad(wo_p, ((0, 0), (0, dpad - d), (0, 0)))
    wo_p = wo_p.reshape(num_heads * dpad, H)

    if mxu_dtype is not None:
        wqkv = wqkv.astype(mxu_dtype)
        wo_p = wo_p.astype(mxu_dtype)

    return {"wqkv": wqkv, "bqkv": bqkv, "wo": wo_p, "bo": bo,
            "num_heads": num_heads, "head_dim": d, "dpad": dpad}


# --------------------------------------------------------------------------
# Kernel: one grid step == one batch element.
# --------------------------------------------------------------------------
def _attention_kernel(x_ref, wqkv_ref, wo_ref, bqkv_ref, bo_ref, out_ref,
                      *rest, num_heads, dpad, seq_len, seq_pad,
                      has_weights, exact_recip):
    """Refs:
      x_ref       (1, S, H)             input dtype
      wqkv_ref    (H, nH*3*dpad)        MXU feed dtype (scale folded into q)
      wo_ref      (nH*dpad, H)          MXU feed dtype (padded rows are zero)
      bqkv_ref    (1, nH*3*dpad)
      bo_ref      (1, H)
      out_ref     (1, S, H)
      weights_ref (1, nH, S, S_pad)     optional (lane-padded probs)
      qkv_scr     (S, nH*3*dpad) VMEM   scratch
      ctx_scr     (S, nH*dpad)   VMEM   scratch
    """
    if has_weights:
        weights_ref, qkv_scr, ctx_scr = rest
    else:
        weights_ref = None
        qkv_scr, ctx_scr = rest

    cdt = wqkv_ref.dtype                      # MXU operand dtype
    x = x_ref[0].astype(cdt)                  # (S, H)

    # Fused QKV projection: ONE wide MXU matmul, f32 accumulation, f32 bias.
    qkv = jnp.dot(x, wqkv_ref[...], preferred_element_type=jnp.float32)
    qkv = qkv + bqkv_ref[...].astype(jnp.float32)
    qkv_scr[...] = qkv.astype(cdt)            # park in VMEM; slabs reloaded per head

    # Hoisted zero pad for the lane-dense weights store (not re-created per head).
    pad_zeros = None
    if weights_ref is not None and seq_pad != seq_len:
        pad_zeros = jnp.zeros((seq_len, seq_pad - seq_len), jnp.float32)

    # Static per-head loop: all slices below are static, 128-lane-aligned views
    # (dpad is a multiple of 128), and per-head results go straight to scratch /
    # output refs, so nothing stays live across heads.
    for h in range(num_heads):
        base = h * 3 * dpad
        qh = qkv_scr[:, base:base + dpad]                 # (S, dpad)
        kh = qkv_scr[:, base + dpad:base + 2 * dpad]      # (S, dpad)
        vh = qkv_scr[:, base + 2 * dpad:base + 3 * dpad]  # (S, dpad)

        # q @ k^T contracting the last dims (no explicit transpose); the scale
        # is already folded into q, and zero-padded columns contribute nothing.
        scores = lax.dot_general(qh, kh, (((1,), (1,)), ((), ())),
                                 preferred_element_type=jnp.float32)  # (S, S)

        # Numerically stable softmax in f32.
        m = jnp.max(scores, axis=-1, keepdims=True)
        e = jnp.exp(scores - m)
        denom = jnp.sum(e, axis=-1, keepdims=True)
        # Exact reciprocal when the probs are returned to the caller (so they
        # sum to 1); fast EUP approximation otherwise.
        probs = e * pl.reciprocal(denom, approx=not exact_recip)

        if weights_ref is not None:
            if pad_zeros is not None:
                w_row = jnp.concatenate([probs, pad_zeros], axis=-1)  # (S, S_pad)
            else:
                w_row = probs
            weights_ref[0, h] = w_row.astype(weights_ref.dtype)

        ctx_h = jnp.dot(probs.astype(cdt), vh,
                        preferred_element_type=jnp.float32)           # (S, dpad)
        ctx_scr[:, h * dpad:(h + 1) * dpad] = ctx_h.astype(cdt)

    # Single full-contraction output projection over the padded ctx layout
    # (padded rows of Wo are zero, so the padding is inert).
    out = jnp.dot(ctx_scr[...], wo_ref[...], preferred_element_type=jnp.float32)
    out = out + bo_ref[...].astype(jnp.float32)
    out_ref[0] = out.astype(out_ref.dtype)


# --------------------------------------------------------------------------
# Wrapper.
# --------------------------------------------------------------------------
def attention_forward(hidden_states, prepared, *, return_weights=True,
                      weights_dtype=None):
    """hidden_states: (B, S, H).  Returns (attention_output, weights|None).

    For production, prefer return_weights=False (the probs writeback is the
    dominant HBM stream) or weights_dtype=jnp.bfloat16.
    """
    B, S, H = hidden_states.shape
    nH = prepared["num_heads"]
    dpad = prepared["dpad"]
    wqkv, bqkv = prepared["wqkv"], prepared["bqkv"]
    wo, bo = prepared["wo"], prepared["bo"]
    cdt = wqkv.dtype
    S_pad = _round_up(S, 128)                 # lane-dense probs store width

    if weights_dtype is None:
        weights_dtype = hidden_states.dtype

    kernel = functools.partial(
        _attention_kernel, num_heads=nH, dpad=dpad, seq_len=S, seq_pad=S_pad,
        has_weights=return_weights, exact_recip=return_weights)

    def _run(single_buffer_invariants):
        inv_kw = ({"pipeline_mode": pl.Buffered(1)}
                  if single_buffer_invariants else {})
        in_specs = [
            pl.BlockSpec((1, S, H), lambda b: (b, 0, 0)),              # x
            pl.BlockSpec(wqkv.shape, lambda b: (0, 0), **inv_kw),      # Wqkv
            pl.BlockSpec(wo.shape, lambda b: (0, 0), **inv_kw),        # Wo
            pl.BlockSpec(bqkv.shape, lambda b: (0, 0), **inv_kw),      # bqkv
            pl.BlockSpec(bo.shape, lambda b: (0, 0), **inv_kw),        # bo
        ]
        out_shape = [jax.ShapeDtypeStruct((B, S, H), hidden_states.dtype)]
        out_specs = [pl.BlockSpec((1, S, H), lambda b: (b, 0, 0))]
        if return_weights:
            out_shape.append(
                jax.ShapeDtypeStruct((B, nH, S, S_pad), weights_dtype))
            out_specs.append(
                pl.BlockSpec((1, nH, S, S_pad), lambda b: (b, 0, 0, 0)))

        # VMEM budget derived from the actual block sizes (instead of a flat
        # constant); cap at v7x's 64 MiB physical VMEM.
        isz = lambda dt: jnp.dtype(dt).itemsize
        wbuf = 1 if single_buffer_invariants else 2
        est = (2 * S * H * isz(hidden_states.dtype)            # x (2 bufs)
               + 2 * S * H * isz(hidden_states.dtype)          # out (2 bufs)
               + wbuf * (wqkv.size + wo.size) * isz(cdt)       # invariant weights
               + wbuf * (bqkv.size * isz(bqkv.dtype) + bo.size * isz(bo.dtype))
               + (S * 3 * nH * dpad + S * nH * dpad) * isz(cdt)  # scratches
               + 8 * S * max(S_pad, dpad) * 4)                 # f32 temporaries
        if return_weights:
            est += 2 * nH * S * S_pad * isz(weights_dtype)
        vmem_limit = int(min(64 << 20, max(32 << 20, int(est * 1.5))))

        return pl.pallas_call(
            kernel,
            out_shape=tuple(out_shape),
            grid_spec=pltpu.PrefetchScalarGridSpec(
                num_scalar_prefetch=0,
                grid=(B,),
                in_specs=in_specs,
                out_specs=tuple(out_specs),
                scratch_shapes=[
                    pltpu.VMEM((S, nH * 3 * dpad), cdt),   # fused qkv
                    pltpu.VMEM((S, nH * dpad), cdt),       # concatenated ctx
                ],
            ),
            compiler_params=pltpu.CompilerParams(
                dimension_semantics=("parallel",),
                vmem_limit_bytes=vmem_limit,
            ),
        )(hidden_states, wqkv, wo, bqkv, bo)

    try:
        results = _run(True)
    except Exception:
        # Fallback if this JAX build rejects pipeline_mode=pl.Buffered(1) on
        # top-level pallas_call BlockSpecs (zero-cost either way: the blocks
        # are grid-invariant).
        results = _run(False)

    if return_weights:
        out, weights = results
        if S_pad != S:
            weights = weights[..., :S]   # strip lane padding on the host side
        return out, weights
    return results[0], None


# --------------------------------------------------------------------------
# Pure-JAX reference (mirrors the PyTorch forward; dropout = identity).
# --------------------------------------------------------------------------
def _reference(hidden_states, params, *, num_heads):
    B, S, H = hidden_states.shape
    d = H // num_heads
    x = hidden_states.astype(jnp.float32)
    q = x @ params["wq"].astype(jnp.float32) + params["bq"].astype(jnp.float32)[0]
    k = x @ params["wk"].astype(jnp.float32) + params["bk"].astype(jnp.float32)[0]
    v = x @ params["wv"].astype(jnp.float32) + params["bv"].astype(jnp.float32)[0]

    def split(t):  # (B,S,H) -> (B,nH,S,d)
        return t.reshape(B, S, num_heads, d).transpose(0, 2, 1, 3)

    q, k, v = split(q), split(k), split(v)
    scores = jnp.einsum("bhqd,bhkd->bhqk", q, k) / math.sqrt(d)
    probs = jax.nn.softmax(scores, axis=-1)
    ctx = jnp.einsum("bhqk,bhkd->bhqd", probs, v)
    ctx = ctx.transpose(0, 2, 1, 3).reshape(B, S, H)
    out = ctx @ params["wo"].astype(jnp.float32) + params["bo"].astype(jnp.float32)[0]
    return out, probs


if __name__ == "__main__":
    # Small config consistent with the module: hidden_size=32, num_heads=4.
    B, S, H = 2, 8, 32
    num_heads = 4

    key = jax.random.PRNGKey(0)
    keys = jax.random.split(key, 9)
    wscale = 0.05
    params = {
        # Stored as [in, out] (i.e. already W.T relative to torch Linear).
        "wq": wscale * jax.random.normal(keys[0], (H, H), jnp.float32),
        "wk": wscale * jax.random.normal(keys[1], (H, H), jnp.float32),
        "wv": wscale * jax.random.normal(keys[2], (H, H), jnp.float32),
        "wo": wscale * jax.random.normal(keys[3], (H, H), jnp.float32),
        "bq": wscale * jax.random.normal(keys[4], (1, H), jnp.float32),
        "bk": wscale * jax.random.normal(keys[5], (1, H), jnp.float32),
        "bv": wscale * jax.random.normal(keys[6], (1, H), jnp.float32),
        "bo": wscale * jax.random.normal(keys[7], (1, H), jnp.float32),
    }
    hidden_states = jax.random.normal(keys[8], (B, S, H), jnp.float32)

    ref_out, ref_w = _reference(hidden_states, params, num_heads=num_heads)

    # 1) f32 end-to-end (matches the PyTorch module's default dtype).
    prep_f32 = prepare_params(params, num_heads=num_heads)
    out, weights = attention_forward(hidden_states, prep_f32)
    out = jax.block_until_ready(out)
    weights = jax.block_until_ready(weights)
    assert out.shape == (B, S, H)
    assert weights.shape == (B, num_heads, S, S)
    assert jnp.allclose(out, ref_out, atol=1e-3, rtol=1e-3)
    assert jnp.allclose(weights, ref_w, atol=1e-3, rtol=1e-3)

    # 2) Output-only (production) path: skips the probs writeback entirely.
    out_only, w_none = attention_forward(hidden_states, prep_f32,
                                         return_weights=False)
    out_only = jax.block_until_ready(out_only)
    assert w_none is None
    assert jnp.allclose(out_only, ref_out, atol=2e-3, rtol=2e-3)

    # 3) f32 model with bf16 MXU feeds (f32 accumulation + f32 softmax).
    prep_bf16feed = prepare_params(params, num_heads=num_heads,
                                   mxu_dtype=jnp.bfloat16)
    out_bf, w_bf = attention_forward(hidden_states, prep_bf16feed)
    out_bf = jax.block_until_ready(out_bf)
    w_bf = jax.block_until_ready(w_bf)
    assert jnp.allclose(out_bf, ref_out, atol=3e-2, rtol=3e-2)
    assert jnp.allclose(w_bf, ref_w, atol=2e-2, rtol=2e-2)

    # 4) Fully bf16 model (activations + params), bf16 probs writeback.
    params_bf16 = {k: v.astype(jnp.bfloat16) for k, v in params.items()}
    prep_bf16 = prepare_params(params_bf16, num_heads=num_heads)
    out_b, w_b = attention_forward(hidden_states.astype(jnp.bfloat16), prep_bf16)
    out_b = jax.block_until_ready(out_b)
    w_b = jax.block_until_ready(w_b)
    assert jnp.allclose(out_b.astype(jnp.float32), ref_out, atol=3e-2, rtol=3e-2)
    assert jnp.allclose(w_b.astype(jnp.float32), ref_w, atol=2e-2, rtol=2e-2)

    print("KERNEL_OK")
</pallas_src>

<mosaic_0001>
module attributes {stable_mosaic.version = 11 : i64} {
  func.func @_attention_kernel(%arg0: i32, %arg1: memref<1x8x32xf32, #tpu.memory_space<vmem>>, %arg2: memref<32x1536xf32, #tpu.memory_space<vmem>>, %arg3: memref<512x32xf32, #tpu.memory_space<vmem>>, %arg4: memref<1x1536xf32, #tpu.memory_space<vmem>>, %arg5: memref<1x32xf32, #tpu.memory_space<vmem>>, %arg6: memref<1x8x32xf32, #tpu.memory_space<vmem>>, %arg7: memref<1x4x8x128xf32, #tpu.memory_space<vmem>>, %arg8: memref<8x1536xf32, #tpu.memory_space<vmem>>, %arg9: memref<8x512xf32, #tpu.memory_space<vmem>>) attributes {dimension_semantics = [#tpu.dimension_semantics<parallel>], iteration_bounds = array<i64: 2>, scalar_prefetch = 0 : i64, scratch_operands = 2 : i64, tpu.core_type = #tpu.core_type<tc>, window_params = [{transform_indices = @transform_0, window_bounds = array<i64: 1, 8, 32>}, {pipeline_mode = #tpu.pipeline_mode<synchronous>, transform_indices = @transform_1, window_bounds = array<i64: 32, 1536>}, {pipeline_mode = #tpu.pipeline_mode<synchronous>, transform_indices = @transform_2, window_bounds = array<i64: 512, 32>}, {pipeline_mode = #tpu.pipeline_mode<synchronous>, transform_indices = @transform_3, window_bounds = array<i64: 1, 1536>}, {pipeline_mode = #tpu.pipeline_mode<synchronous>, transform_indices = @transform_4, window_bounds = array<i64: 1, 32>}, {transform_indices = @transform_5, window_bounds = array<i64: 1, 8, 32>}, {transform_indices = @transform_6, window_bounds = array<i64: 1, 4, 8, 128>}]} {
    %c0 = arith.constant 0 : index
    %c0_0 = arith.constant 0 : index
    %c0_1 = arith.constant 0 : index
    %0 = vector.load %arg1[%c0, %c0_0, %c0_1] : memref<1x8x32xf32, #tpu.memory_space<vmem>>, vector<1x8x32xf32>
    %1 = vector.shape_cast %0 : vector<1x8x32xf32> to vector<8x32xf32>
    %c0_2 = arith.constant 0 : index
    %c0_3 = arith.constant 0 : index
    %2 = vector.load %arg2[%c0_2, %c0_3] : memref<32x1536xf32, #tpu.memory_space<vmem>>, vector<32x1536xf32>
    %cst = arith.constant dense<0.000000e+00> : vector<8x1536xf32>
    %3 = tpu.matmul %1, %2, %cst {dimension_numbers = #tpu.dot_dimension_numbers<[1], [0], [0], [1], [0, 0, 1, 1], [], []>} : vector<8x32xf32>, vector<32x1536xf32>, vector<8x1536xf32> -> vector<8x1536xf32>
    %c0_4 = arith.constant 0 : index
    %c0_5 = arith.constant 0 : index
    %4 = vector.load %arg4[%c0_4, %c0_5] : memref<1x1536xf32, #tpu.memory_space<vmem>>, vector<1x1536xf32>
    %5 = vector.broadcast %4 : vector<1x1536xf32> to vector<8x1536xf32>
    %6 = arith.addf %3, %5 : vector<8x1536xf32>
    %c0_6 = arith.constant 0 : index
    %c0_7 = arith.constant 0 : index
    %7 = vector.load %arg8[%c0_6, %c0_7] : memref<8x1536xf32, #tpu.memory_space<vmem>>, vector<8x1536xf32>
    tpu.vector_store %arg8[%c0_6, %c0_7], %6 {strides = array<i32>} : memref<8x1536xf32, #tpu.memory_space<vmem>>, vector<8x1536xf32>,
    %cst_8 = arith.constant 0.000000e+00 : f32
    %8 = vector.broadcast %cst_8 : f32 to vector<8x120xf32>
    %c0_9 = arith.constant 0 : index
    %c0_10 = arith.constant 0 : index
    %9 = vector.load %arg8[%c0_9, %c0_10] : memref<8x1536xf32, #tpu.memory_space<vmem>>, vector<8x128xf32>
    %c0_11 = arith.constant 0 : index
    %c128 = arith.constant 128 : index
    %10 = vector.load %arg8[%c0_11, %c128] : memref<8x1536xf32, #tpu.memory_space<vmem>>, vector<8x128xf32>
    %c0_12 = arith.constant 0 : index
    %c256 = arith.constant 256 : index
    %11 = vector.load %arg8[%c0_12, %c256] : memref<8x1536xf32, #tpu.memory_space<vmem>>, vector<8x128xf32>
    %cst_13 = arith.constant dense<0.000000e+00> : vector<8x8xf32>
    %12 = tpu.matmul %9, %10, %cst_13 {dimension_numbers = #tpu.dot_dimension_numbers<[1], [1], [0], [0], [0, 0, 1, 0], [], []>} : vector<8x128xf32>, vector<8x128xf32>, vector<8x8xf32> -> vector<8x8xf32>
    %cst_14 = arith.constant dense<0xFF800000> : vector<8xf32>
    %13 = vector.multi_reduction <maximumf>, %12, %cst_14 [1] : vector<8x8xf32> to vector<8xf32>
    %14 = vector.shape_cast %13 : vector<8xf32> to vector<8x1xf32>
    %15 = vector.broadcast %14 : vector<8x1xf32> to vector<8x8xf32>
    %16 = arith.subf %12, %15 : vector<8x8xf32>
    %17 = math.exp %16 : vector<8x8xf32>
    %cst_15 = arith.constant dense<0.000000e+00> : vector<8xf32>
    %18 = vector.multi_reduction <add>, %17, %cst_15 [1] : vector<8x8xf32> to vector<8xf32>
    %19 = vector.shape_cast %18 : vector<8xf32> to vector<8x1xf32>
    %20 = tpu.reciprocal %19 : vector<8x1xf32> -> vector<8x1xf32>
    %21 = vector.broadcast %20 : vector<8x1xf32> to vector<8x8xf32>
    %22 = arith.mulf %17, %21 : vector<8x8xf32>
    %23 = tpu.concatenate %22, %8 in 1 : vector<8x8xf32>, vector<8x120xf32> -> vector<8x128xf32>
    %c0_16 = arith.constant 0 : index
    %c0_17 = arith.constant 0 : index
    %c0_18 = arith.constant 0 : index
    %c0_19 = arith.constant 0 : index
    %24 = vector.load %arg7[%c0_16, %c0_17, %c0_18, %c0_19] : memref<1x4x8x128xf32, #tpu.memory_space<vmem>>, vector<1x1x8x128xf32>
    %25 = vector.shape_cast %24 : vector<1x1x8x128xf32> to vector<8x128xf32>
    %26 = vector.shape_cast %23 : vector<8x128xf32> to vector<1x1x8x128xf32>
    tpu.vector_store %arg7[%c0_16, %c0_17, %c0_18, %c0_19], %26 {strides = array<i32>} : memref<1x4x8x128xf32, #tpu.memory_space<vmem>>, vector<1x1x8x128xf32>,
    %cst_20 = arith.constant dense<0.000000e+00> : vector<8x128xf32>
    %27 = tpu.matmul %22, %11, %cst_20 {dimension_numbers = #tpu.dot_dimension_numbers<[1], [0], [0], [1], [0, 0, 1, 1], [], []>} : vector<8x8xf32>, vector<8x128xf32>, vector<8x128xf32> -> vector<8x128xf32>
    %c0_21 = arith.constant 0 : index
    %c0_22 = arith.constant 0 : index
    %28 = vector.load %arg9[%c0_21, %c0_22] : memref<8x512xf32, #tpu.memory_space<vmem>>, vector<8x128xf32>
    tpu.vector_store %arg9[%c0_21, %c0_22], %27 {strides = array<i32>} : memref<8x512xf32, #tpu.memory_space<vmem>>, vector<8x128xf32>,
    %c0_23 = arith.constant 0 : index
    %c384 = arith.constant 384 : index
    %29 = vector.load %arg8[%c0_23, %c384] : memref<8x1536xf32, #tpu.memory_space<vmem>>, vector<8x128xf32>
    %c0_24 = arith.constant 0 : index
    %c512 = arith.constant 512 : index
    %30 = vector.load %arg8[%c0_24, %c512] : memref<8x1536xf32, #tpu.memory_space<vmem>>, vector<8x128xf32>
    %c0_25 = arith.constant 0 : index
    %c640 = arith.constant 640 : index
    %31 = vector.load %arg8[%c0_25, %c640] : memref<8x1536xf32, #tpu.memory_space<vmem>>, vector<8x128xf32>
    %cst_26 = arith.constant dense<0.000000e+00> : vector<8x8xf32>
    %32 = tpu.matmul %29, %30, %cst_26 {dimension_numbers = #tpu.dot_dimension_numbers<[1], [1], [0], [0], [0, 0, 1, 0], [], []>} : vector<8x128xf32>, vector<8x128xf32>, vector<8x8xf32> -> vector<8x8xf32>
    %cst_27 = arith.constant dense<0xFF800000> : vector<8xf32>
    %33 = vector.multi_reduction <maximumf>, %32, %cst_27 [1] : vector<8x8xf32> to vector<8xf32>
    %34 = vector.shape_cast %33 : vector<8xf32> to vector<8x1xf32>
    %35 = vector.broadcast %34 : vector<8x1xf32> to vector<8x8xf32>
    %36 = arith.subf %32, %35 : vector<8x8xf32>
    %37 = math.exp %36 : vector<8x8xf32>
    %cst_28 = arith.constant dense<0.000000e+00> : vector<8xf32>
    %38 = vector.multi_reduction <add>, %37, %cst_28 [1] : vector<8x8xf32> to vector<8xf32>
    %39 = vector.shape_cast %38 : vector<8xf32> to vector<8x1xf32>
    %40 = tpu.reciprocal %39 : vector<8x1xf32> -> vector<8x1xf32>
    %41 = vector.broadcast %40 : vector<8x1xf32> to vector<8x8xf32>
    %42 = arith.mulf %37, %41 : vector<8x8xf32>
    %43 = tpu.concatenate %42, %8 in 1 : vector<8x8xf32>, vector<8x120xf32> -> vector<8x128xf32>
    %c0_29 = arith.constant 0 : index
    %c1 = arith.constant 1 : index
    %c0_30 = arith.constant 0 : index
    %c0_31 = arith.constant 0 : index
    %44 = vector.load %arg7[%c0_29, %c1, %c0_30, %c0_31] : memref<1x4x8x128xf32, #tpu.memory_space<vmem>>, vector<1x1x8x128xf32>
    %45 = vector.shape_cast %44 : vector<1x1x8x128xf32> to vector<8x128xf32>
    %46 = vector.shape_cast %43 : vector<8x128xf32> to vector<1x1x8x128xf32>
    tpu.vector_store %arg7[%c0_29, %c1, %c0_30, %c0_31], %46 {strides = array<i32>} : memref<1x4x8x128xf32, #tpu.memory_space<vmem>>, vector<1x1x8x128xf32>,
    %cst_32 = arith.constant dense<0.000000e+00> : vector<8x128xf32>
    %47 = tpu.matmul %42, %31, %cst_32 {dimension_numbers = #tpu.dot_dimension_numbers<[1], [0], [0], [1], [0, 0, 1, 1], [], []>} : vector<8x8xf32>, vector<8x128xf32>, vector<8x128xf32> -> vector<8x128xf32>
    %c0_33 = arith.constant 0 : index
    %c128_34 = arith.constant 128 : index
    %48 = vector.load %arg9[%c0_33, %c128_34] : memref<8x512xf32, #tpu.memory_space<vmem>>, vector<8x128xf32>
    tpu.vector_store %arg9[%c0_33, %c128_34], %47 {strides = array<i32>} : memref<8x512xf32, #tpu.memory_space<vmem>>, vector<8x128xf32>,
    %c0_35 = arith.constant 0 : index
    %c768 = arith.constant 768 : index
    %49 = vector.load %arg8[%c0_35, %c768] : memref<8x1536xf32, #tpu.memory_space<vmem>>, vector<8x128xf32>
    %c0_36 = arith.constant 0 : index
    %c896 = arith.constant 896 : index
    %50 = vector.load %arg8[%c0_36, %c896] : memref<8x1536xf32, #tpu.memory_space<vmem>>, vector<8x128xf32>
    %c0_37 = arith.constant 0 : index
    %c1024 = arith.constant 1024 : index
    %51 = vector.load %arg8[%c0_37, %c1024] : memref<8x1536xf32, #tpu.memory_space<vmem>>, vector<8x128xf32>
    %cst_38 = arith.constant dense<0.000000e+00> : vector<8x8xf32>
    %52 = tpu.matmul %49, %50, %cst_38 {dimension_numbers = #tpu.dot_dimension_numbers<[1], [1], [0], [0], [0, 0, 1, 0], [], []>} : vector<8x128xf32>, vector<8x128xf32>, vector<8x8xf32> -> vector<8x8xf32>
    %cst_39 = arith.constant dense<0xFF800000> : vector<8xf32>
    %53 = vector.multi_reduction <maximumf>, %52, %cst_39 [1] : vector<8x8xf32> to vector<8xf32>
    %54 = vector.shape_cast %53 : vector<8xf32> to vector<8x1xf32>
    %55 = vector.broadcast %54 : vector<8x1xf32> to vector<8x8xf32>
    %56 = arith.subf %52, %55 : vector<8x8xf32>
    %57 = math.exp %56 : vector<8x8xf32>
    %cst_40 = arith.constant dense<0.000000e+00> : vector<8xf32>
    %58 = vector.multi_reduction <add>, %57, %cst_40 [1] : vector<8x8xf32> to vector<8xf32>
    %59 = vector.shape_cast %58 : vector<8xf32> to vector<8x1xf32>
    %60 = tpu.reciprocal %59 : vector<8x1xf32> -> vector<8x1xf32>
    %61 = vector.broadcast %60 : vector<8x1xf32> to vector<8x8xf32>
    %62 = arith.mulf %57, %61 : vector<8x8xf32>
    %63 = tpu.concatenate %62, %8 in 1 : vector<8x8xf32>, vector<8x120xf32> -> vector<8x128xf32>
    %c0_41 = arith.constant 0 : index
    %c2 = arith.constant 2 : index
    %c0_42 = arith.constant 0 : index
    %c0_43 = arith.constant 0 : index
    %64 = vector.load %arg7[%c0_41, %c2, %c0_42, %c0_43] : memref<1x4x8x128xf32, #tpu.memory_space<vmem>>, vector<1x1x8x128xf32>
    %65 = vector.shape_cast %64 : vector<1x1x8x128xf32> to vector<8x128xf32>
    %66 = vector.shape_cast %63 : vector<8x128xf32> to vector<1x1x8x128xf32>
    tpu.vector_store %arg7[%c0_41, %c2, %c0_42, %c0_43], %66 {strides = array<i32>} : memref<1x4x8x128xf32, #tpu.memory_space<vmem>>, vector<1x1x8x128xf32>,
    %cst_44 = arith.constant dense<0.000000e+00> : vector<8x128xf32>
    %67 = tpu.matmul %62, %51, %cst_44 {dimension_numbers = #tpu.dot_dimension_numbers<[1], [0], [0], [1], [0, 0, 1, 1], [], []>} : vector<8x8xf32>, vector<8x128xf32>, vector<8x128xf32> -> vector<8x128xf32>
    %c0_45 = arith.constant 0 : index
    %c256_46 = arith.constant 256 : index
    %68 = vector.load %arg9[%c0_45, %c256_46] : memref<8x512xf32, #tpu.memory_space<vmem>>, vector<8x128xf32>
    tpu.vector_store %arg9[%c0_45, %c256_46], %67 {strides = array<i32>} : memref<8x512xf32, #tpu.memory_space<vmem>>, vector<8x128xf32>,
    %c0_47 = arith.constant 0 : index
    %c1152 = arith.constant 1152 : index
    %69 = vector.load %arg8[%c0_47, %c1152] : memref<8x1536xf32, #tpu.memory_space<vmem>>, vector<8x128xf32>
    %c0_48 = arith.constant 0 : index
    %c1280 = arith.constant 1280 : index
    %70 = vector.load %arg8[%c0_48, %c1280] : memref<8x1536xf32, #tpu.memory_space<vmem>>, vector<8x128xf32>
    %c0_49 = arith.constant 0 : index
    %c1408 = arith.constant 1408 : index
    %71 = vector.load %arg8[%c0_49, %c1408] : memref<8x1536xf32, #tpu.memory_space<vmem>>, vector<8x128xf32>
    %cst_50 = arith.constant dense<0.000000e+00> : vector<8x8xf32>
    %72 = tpu.matmul %69, %70, %cst_50 {dimension_numbers = #tpu.dot_dimension_numbers<[1], [1], [0], [0], [0, 0, 1, 0], [], []>} : vector<8x128xf32>, vector<8x128xf32>, vector<8x8xf32> -> vector<8x8xf32>
    %cst_51 = arith.constant dense<0xFF800000> : vector<8xf32>
    %73 = vector.multi_reduction <maximumf>, %72, %cst_51 [1] : vector<8x8xf32> to vector<8xf32>
    %74 = vector.shape_cast %73 : vector<8xf32> to vector<8x1xf32>
    %75 = vector.broadcast %74 : vector<8x1xf32> to vector<8x8xf32>
    %76 = arith.subf %72, %75 : vector<8x8xf32>
    %77 = math.exp %76 : vector<8x8xf32>
    %cst_52 = arith.constant dense<0.000000e+00> : vector<8xf32>
    %78 = vector.multi_reduction <add>, %77, %cst_52 [1] : vector<8x8xf32> to vector<8xf32>
    %79 = vector.shape_cast %78 : vector<8xf32> to vector<8x1xf32>
    %80 = tpu.reciprocal %79 : vector<8x1xf32> -> vector<8x1xf32>
    %81 = vector.broadcast %80 : vector<8x1xf32> to vector<8x8xf32>
    %82 = arith.mulf %77, %81 : vector<8x8xf32>
    %83 = tpu.concatenate %82, %8 in 1 : vector<8x8xf32>, vector<8x120xf32> -> vector<8x128xf32>
    %c0_53 = arith.constant 0 : index
    %c3 = arith.constant 3 : index
    %c0_54 = arith.constant 0 : index
    %c0_55 = arith.constant 0 : index
    %84 = vector.load %arg7[%c0_53, %c3, %c0_54, %c0_55] : memref<1x4x8x128xf32, #tpu.memory_space<vmem>>, vector<1x1x8x128xf32>
    %85 = vector.shape_cast %84 : vector<1x1x8x128xf32> to vector<8x128xf32>
    %86 = vector.shape_cast %83 : vector<8x128xf32> to vector<1x1x8x128xf32>
    tpu.vector_store %arg7[%c0_53, %c3, %c0_54, %c0_55], %86 {strides = array<i32>} : memref<1x4x8x128xf32, #tpu.memory_space<vmem>>, vector<1x1x8x128xf32>,
    %cst_56 = arith.constant dense<0.000000e+00> : vector<8x128xf32>
    %87 = tpu.matmul %82, %71, %cst_56 {dimension_numbers = #tpu.dot_dimension_numbers<[1], [0], [0], [1], [0, 0, 1, 1], [], []>} : vector<8x8xf32>, vector<8x128xf32>, vector<8x128xf32> -> vector<8x128xf32>
    %c0_57 = arith.constant 0 : index
    %c384_58 = arith.constant 384 : index
    %88 = vector.load %arg9[%c0_57, %c384_58] : memref<8x512xf32, #tpu.memory_space<vmem>>, vector<8x128xf32>
    tpu.vector_store %arg9[%c0_57, %c384_58], %87 {strides = array<i32>} : memref<8x512xf32, #tpu.memory_space<vmem>>, vector<8x128xf32>,
    %c0_59 = arith.constant 0 : index
    %c0_60 = arith.constant 0 : index
    %89 = vector.load %arg9[%c0_59, %c0_60] : memref<8x512xf32, #tpu.memory_space<vmem>>, vector<8x512xf32>
    %c0_61 = arith.constant 0 : index
    %c0_62 = arith.constant 0 : index
    %90 = vector.load %arg3[%c0_61, %c0_62] : memref<512x32xf32, #tpu.memory_space<vmem>>, vector<512x32xf32>
    %cst_63 = arith.constant dense<0.000000e+00> : vector<8x32xf32>
    %91 = tpu.matmul %89, %90, %cst_63 {dimension_numbers = #tpu.dot_dimension_numbers<[1], [0], [0], [1], [0, 0, 1, 1], [], []>} : vector<8x512xf32>, vector<512x32xf32>, vector<8x32xf32> -> vector<8x32xf32>
    %c0_64 = arith.constant 0 : index
    %c0_65 = arith.constant 0 : index
    %92 = vector.load %arg5[%c0_64, %c0_65] : memref<1x32xf32, #tpu.memory_space<vmem>>, vector<1x32xf32>
    %93 = vector.broadcast %92 : vector<1x32xf32> to vector<8x32xf32>
    %94 = arith.addf %91, %93 : vector<8x32xf32>
    %c0_66 = arith.constant 0 : index
    %c0_67 = arith.constant 0 : index
    %c0_68 = arith.constant 0 : index
    %95 = vector.load %arg6[%c0_66, %c0_67, %c0_68] : memref<1x8x32xf32, #tpu.memory_space<vmem>>, vector<1x8x32xf32>
    %96 = vector.shape_cast %95 : vector<1x8x32xf32> to vector<8x32xf32>
    %97 = vector.shape_cast %94 : vector<8x32xf32> to vector<1x8x32xf32>
    tpu.vector_store %arg6[%c0_66, %c0_67, %c0_68], %97 {strides = array<i32>} : memref<1x8x32xf32, #tpu.memory_space<vmem>>, vector<1x8x32xf32>,
    return
  }
  func.func @transform_0(%arg0: i32) -> (i32, i32, i32) {
    %c0_i32 = arith.constant 0 : i32
    %c0_i32_0 = arith.constant 0 : i32
    %c0_i32_1 = arith.constant 0 : i32
    return %arg0, %c0_i32, %c0_i32_0 : i32, i32, i32
  }
  func.func @transform_1(%arg0: i32) -> (i32, i32) {
    %c0_i32 = arith.constant 0 : i32
    %c0_i32_0 = arith.constant 0 : i32
    %c0_i32_1 = arith.constant 0 : i32
    return %c0_i32, %c0_i32_0 : i32, i32
  }
  func.func @transform_2(%arg0: i32) -> (i32, i32) {
    %c0_i32 = arith.constant 0 : i32
    %c0_i32_0 = arith.constant 0 : i32
    %c0_i32_1 = arith.constant 0 : i32
    return %c0_i32, %c0_i32_0 : i32, i32
  }
  func.func @transform_3(%arg0: i32) -> (i32, i32) {
    %c0_i32 = arith.constant 0 : i32
    %c0_i32_0 = arith.constant 0 : i32
    %c0_i32_1 = arith.constant 0 : i32
    return %c0_i32, %c0_i32_0 : i32, i32
  }
  func.func @transform_4(%arg0: i32) -> (i32, i32) {
    %c0_i32 = arith.constant 0 : i32
    %c0_i32_0 = arith.constant 0 : i32
    %c0_i32_1 = arith.constant 0 : i32
    return %c0_i32, %c0_i32_0 : i32, i32
  }
  func.func @transform_5(%arg0: i32) -> (i32, i32, i32) {
    %c0_i32 = arith.constant 0 : i32
    %c0_i32_0 = arith.constant 0 : i32
    %c0_i32_1 = arith.constant 0 : i32
    return %arg0, %c0_i32, %c0_i32_0 : i32, i32, i32
  }
  func.func @transform_6(%arg0: i32) -> (i32, i32, i32, i32) {
    %c0_i32 = arith.constant 0 : i32
    %c0_i32_0 = arith.constant 0 : i32
    %c0_i32_1 = arith.constant 0 : i32
    %c0_i32_2 = arith.constant 0 : i32
    return %arg0, %c0_i32, %c0_i32_0, %c0_i32_1 : i32, i32, i32, i32
  }
}

module attributes {stable_mosaic.version = 11 : i64} {
  func.func @_attention_kernel(%arg0: i32, %arg1: memref<1x8x32xf32, #tpu.memory_space<vmem>>, %arg2: memref<32x1536xf32, #tpu.memory_space<vmem>>, %arg3: memref<512x32xf32, #tpu.memory_space<vmem>>, %arg4: memref<1x1536xf32, #tpu.memory_space<vmem>>, %arg5: memref<1x32xf32, #tpu.memory_space<vmem>>, %arg6: memref<1x8x32xf32, #tpu.memory_space<vmem>>, %arg7: memref<1x4x8x128xf32, #tpu.memory_space<vmem>>, %arg8: memref<8x1536xf32, #tpu.memory_space<vmem>>, %arg9: memref<8x512xf32, #tpu.memory_space<vmem>>) attributes {dimension_semantics = [#tpu.dimension_semantics<parallel>], iteration_bounds = array<i64: 2>, scalar_prefetch = 0 : i64, scratch_operands = 2 : i64, tpu.core_type = #tpu.core_type<tc>, window_params = [{transform_indices = @transform_0, window_bounds = array<i64: 1, 8, 32>}, {pipeline_mode = #tpu.pipeline_mode<synchronous>, transform_indices = @transform_1, window_bounds = array<i64: 32, 1536>}, {pipeline_mode = #tpu.pipeline_mode<synchronous>, transform_indices = @transform_2, window_bounds = array<i64: 512, 32>}, {pipeline_mode = #tpu.pipeline_mode<synchronous>, transform_indices = @transform_3, window_bounds = array<i64: 1, 1536>}, {pipeline_mode = #tpu.pipeline_mode<synchronous>, transform_indices = @transform_4, window_bounds = array<i64: 1, 32>}, {transform_indices = @transform_5, window_bounds = array<i64: 1, 8, 32>}, {transform_indices = @transform_6, window_bounds = array<i64: 1, 4, 8, 128>}]} {
    %c0 = arith.constant 0 : index
    %c0_0 = arith.constant 0 : index
    %c0_1 = arith.constant 0 : index
    %0 = vector.load %arg1[%c0, %c0_0, %c0_1] : memref<1x8x32xf32, #tpu.memory_space<vmem>>, vector<1x8x32xf32>
    %1 = vector.shape_cast %0 : vector<1x8x32xf32> to vector<8x32xf32>
    %c0_2 = arith.constant 0 : index
    %c0_3 = arith.constant 0 : index
    %2 = vector.load %arg2[%c0_2, %c0_3] : memref<32x1536xf32, #tpu.memory_space<vmem>>, vector<32x1536xf32>
    %cst = arith.constant dense<0.000000e+00> : vector<8x1536xf32>
    %3 = tpu.matmul %1, %2, %cst {dimension_numbers = #tpu.dot_dimension_numbers<[1], [0], [0], [1], [0, 0, 1, 1], [], []>} : vector<8x32xf32>, vector<32x1536xf32>, vector<8x1536xf32> -> vector<8x1536xf32>
    %c0_4 = arith.constant 0 : index
    %c0_5 = arith.constant 0 : index
    %4 = vector.load %arg4[%c0_4, %c0_5] : memref<1x1536xf32, #tpu.memory_space<vmem>>, vector<1x1536xf32>
    %5 = vector.broadcast %4 : vector<1x1536xf32> to vector<8x1536xf32>
    %6 = arith.addf %3, %5 : vector<8x1536xf32>
    %c0_6 = arith.constant 0 : index
    %c0_7 = arith.constant 0 : index
    %7 = vector.load %arg8[%c0_6, %c0_7] : memref<8x1536xf32, #tpu.memory_space<vmem>>, vector<8x1536xf32>
    tpu.vector_store %arg8[%c0_6, %c0_7], %6 {strides = array<i32>} : memref<8x1536xf32, #tpu.memory_space<vmem>>, vector<8x1536xf32>,
    %cst_8 = arith.constant 0.000000e+00 : f32
    %8 = vector.broadcast %cst_8 : f32 to vector<8x120xf32>
    %c0_9 = arith.constant 0 : index
    %c0_10 = arith.constant 0 : index
    %9 = vector.load %arg8[%c0_9, %c0_10] : memref<8x1536xf32, #tpu.memory_space<vmem>>, vector<8x128xf32>
    %c0_11 = arith.constant 0 : index
    %c128 = arith.constant 128 : index
    %10 = vector.load %arg8[%c0_11, %c128] : memref<8x1536xf32, #tpu.memory_space<vmem>>, vector<8x128xf32>
    %c0_12 = arith.constant 0 : index
    %c256 = arith.constant 256 : index
    %11 = vector.load %arg8[%c0_12, %c256] : memref<8x1536xf32, #tpu.memory_space<vmem>>, vector<8x128xf32>
    %cst_13 = arith.constant dense<0.000000e+00> : vector<8x8xf32>
    %12 = tpu.matmul %9, %10, %cst_13 {dimension_numbers = #tpu.dot_dimension_numbers<[1], [1], [0], [0], [0, 0, 1, 0], [], []>} : vector<8x128xf32>, vector<8x128xf32>, vector<8x8xf32> -> vector<8x8xf32>
    %cst_14 = arith.constant dense<0xFF800000> : vector<8xf32>
    %13 = vector.multi_reduction <maximumf>, %12, %cst_14 [1] : vector<8x8xf32> to vector<8xf32>
    %14 = vector.shape_cast %13 : vector<8xf32> to vector<8x1xf32>
    %15 = vector.broadcast %14 : vector<8x1xf32> to vector<8x8xf32>
    %16 = arith.subf %12, %15 : vector<8x8xf32>
    %17 = math.exp %16 : vector<8x8xf32>
    %cst_15 = arith.constant dense<0.000000e+00> : vector<8xf32>
    %18 = vector.multi_reduction <add>, %17, %cst_15 [1] : vector<8x8xf32> to vector<8xf32>
    %19 = vector.shape_cast %18 : vector<8xf32> to vector<8x1xf32>
    %20 = tpu.reciprocal %19 : vector<8x1xf32> -> vector<8x1xf32>
    %21 = vector.broadcast %20 : vector<8x1xf32> to vector<8x8xf32>
    %22 = arith.mulf %17, %21 : vector<8x8xf32>
    %23 = tpu.concatenate %22, %8 in 1 : vector<8x8xf32>, vector<8x120xf32> -> vector<8x128xf32>
    %c0_16 = arith.constant 0 : index
    %c0_17 = arith.constant 0 : index
    %c0_18 = arith.constant 0 : index
    %c0_19 = arith.constant 0 : index
    %24 = vector.load %arg7[%c0_16, %c0_17, %c0_18, %c0_19] : memref<1x4x8x128xf32, #tpu.memory_space<vmem>>, vector<1x1x8x128xf32>
    %25 = vector.shape_cast %24 : vector<1x1x8x128xf32> to vector<8x128xf32>
    %26 = vector.shape_cast %23 : vector<8x128xf32> to vector<1x1x8x128xf32>
    tpu.vector_store %arg7[%c0_16, %c0_17, %c0_18, %c0_19], %26 {strides = array<i32>} : memref<1x4x8x128xf32, #tpu.memory_space<vmem>>, vector<1x1x8x128xf32>,
    %cst_20 = arith.constant dense<0.000000e+00> : vector<8x128xf32>
    %27 = tpu.matmul %22, %11, %cst_20 {dimension_numbers = #tpu.dot_dimension_numbers<[1], [0], [0], [1], [0, 0, 1, 1], [], []>} : vector<8x8xf32>, vector<8x128xf32>, vector<8x128xf32> -> vector<8x128xf32>
    %c0_21 = arith.constant 0 : index
    %c0_22 = arith.constant 0 : index
    %28 = vector.load %arg9[%c0_21, %c0_22] : memref<8x512xf32, #tpu.memory_space<vmem>>, vector<8x128xf32>
    tpu.vector_store %arg9[%c0_21, %c0_22], %27 {strides = array<i32>} : memref<8x512xf32, #tpu.memory_space<vmem>>, vector<8x128xf32>,
    %c0_23 = arith.constant 0 : index
    %c384 = arith.constant 384 : index
    %29 = vector.load %arg8[%c0_23, %c384] : memref<8x1536xf32, #tpu.memory_space<vmem>>, vector<8x128xf32>
    %c0_24 = arith.constant 0 : index
    %c512 = arith.constant 512 : index
    %30 = vector.load %arg8[%c0_24, %c512] : memref<8x1536xf32, #tpu.memory_space<vmem>>, vector<8x128xf32>
    %c0_25 = arith.constant 0 : index
    %c640 = arith.constant 640 : index
    %31 = vector.load %arg8[%c0_25, %c640] : memref<8x1536xf32, #tpu.memory_space<vmem>>, vector<8x128xf32>
    %cst_26 = arith.constant dense<0.000000e+00> : vector<8x8xf32>
    %32 = tpu.matmul %29, %30, %cst_26 {dimension_numbers = #tpu.dot_dimension_numbers<[1], [1], [0], [0], [0, 0, 1, 0], [], []>} : vector<8x128xf32>, vector<8x128xf32>, vector<8x8xf32> -> vector<8x8xf32>
    %cst_27 = arith.constant dense<0xFF800000> : vector<8xf32>
    %33 = vector.multi_reduction <maximumf>, %32, %cst_27 [1] : vector<8x8xf32> to vector<8xf32>
    %34 = vector.shape_cast %33 : vector<8xf32> to vector<8x1xf32>
    %35 = vector.broadcast %34 : vector<8x1xf32> to vector<8x8xf32>
    %36 = arith.subf %32, %35 : vector<8x8xf32>
    %37 = math.exp %36 : vector<8x8xf32>
    %cst_28 = arith.constant dense<0.000000e+00> : vector<8xf32>
    %38 = vector.multi_reduction <add>, %37, %cst_28 [1] : vector<8x8xf32> to vector<8xf32>
    %39 = vector.shape_cast %38 : vector<8xf32> to vector<8x1xf32>
    %40 = tpu.reciprocal %39 : vector<8x1xf32> -> vector<8x1xf32>
    %41 = vector.broadcast %40 : vector<8x1xf32> to vector<8x8xf32>
    %42 = arith.mulf %37, %41 : vector<8x8xf32>
    %43 = tpu.concatenate %42, %8 in 1 : vector<8x8xf32>, vector<8x120xf32> -> vector<8x128xf32>
    %c0_29 = arith.constant 0 : index
    %c1 = arith.constant 1 : index
    %c0_30 = arith.constant 0 : index
    %c0_31 = arith.constant 0 : index
    %44 = vector.load %arg7[%c0_29, %c1, %c0_30, %c0_31] : memref<1x4x8x128xf32, #tpu.memory_space<vmem>>, vector<1x1x8x128xf32>
    %45 = vector.shape_cast %44 : vector<1x1x8x128xf32> to vector<8x128xf32>
    %46 = vector.shape_cast %43 : vector<8x128xf32> to vector<1x1x8x128xf32>
    tpu.vector_store %arg7[%c0_29, %c1, %c0_30, %c0_31], %46 {strides = array<i32>} : memref<1x4x8x128xf32, #tpu.memory_space<vmem>>, vector<1x1x8x128xf32>,
    %cst_32 = arith.constant dense<0.000000e+00> : vector<8x128xf32>
    %47 = tpu.matmul %42, %31, %cst_32 {dimension_numbers = #tpu.dot_dimension_numbers<[1], [0], [0], [1], [0, 0, 1, 1], [], []>} : vector<8x8xf32>, vector<8x128xf32>, vector<8x128xf32> -> vector<8x128xf32>
    %c0_33 = arith.constant 0 : index
    %c128_34 = arith.constant 128 : index
    %48 = vector.load %arg9[%c0_33, %c128_34] : memref<8x512xf32, #tpu.memory_space<vmem>>, vector<8x128xf32>
    tpu.vector_store %arg9[%c0_33, %c128_34], %47 {strides = array<i32>} : memref<8x512xf32, #tpu.memory_space<vmem>>, vector<8x128xf32>,
    %c0_35 = arith.constant 0 : index
    %c768 = arith.constant 768 : index
    %49 = vector.load %arg8[%c0_35, %c768] : memref<8x1536xf32, #tpu.memory_space<vmem>>, vector<8x128xf32>
    %c0_36 = arith.constant 0 : index
    %c896 = arith.constant 896 : index
    %50 = vector.load %arg8[%c0_36, %c896] : memref<8x1536xf32, #tpu.memory_space<vmem>>, vector<8x128xf32>
    %c0_37 = arith.constant 0 : index
    %c1024 = arith.constant 1024 : index
    %51 = vector.load %arg8[%c0_37, %c1024] : memref<8x1536xf32, #tpu.memory_space<vmem>>, vector<8x128xf32>
    %cst_38 = arith.constant dense<0.000000e+00> : vector<8x8xf32>
    %52 = tpu.matmul %49, %50, %cst_38 {dimension_numbers = #tpu.dot_dimension_numbers<[1], [1], [0], [0], [0, 0, 1, 0], [], []>} : vector<8x128xf32>, vector<8x128xf32>, vector<8x8xf32> -> vector<8x8xf32>
    %cst_39 = arith.constant dense<0xFF800000> : vector<8xf32>
    %53 = vector.multi_reduction <maximumf>, %52, %cst_39 [1] : vector<8x8xf32> to vector<8xf32>
    %54 = vector.shape_cast %53 : vector<8xf32> to vector<8x1xf32>
    %55 = vector.broadcast %54 : vector<8x1xf32> to vector<8x8xf32>
    %56 = arith.subf %52, %55 : vector<8x8xf32>
    %57 = math.exp %56 : vector<8x8xf32>
    %cst_40 = arith.constant dense<0.000000e+00> : vector<8xf32>
    %58 = vector.multi_reduction <add>, %57, %cst_40 [1] : vector<8x8xf32> to vector<8xf32>
    %59 = vector.shape_cast %58 : vector<8xf32> to vector<8x1xf32>
    %60 = tpu.reciprocal %59 : vector<8x1xf32> -> vector<8x1xf32>
    %61 = vector.broadcast %60 : vector<8x1xf32> to vector<8x8xf32>
    %62 = arith.mulf %57, %61 : vector<8x8xf32>
    %63 = tpu.concatenate %62, %8 in 1 : vector<8x8xf32>, vector<8x120xf32> -> vector<8x128xf32>
    %c0_41 = arith.constant 0 : index
    %c2 = arith.constant 2 : index
    %c0_42 = arith.constant 0 : index
    %c0_43 = arith.constant 0 : index
    %64 = vector.load %arg7[%c0_41, %c2, %c0_42, %c0_43] : memref<1x4x8x128xf32, #tpu.memory_space<vmem>>, vector<1x1x8x128xf32>
    %65 = vector.shape_cast %64 : vector<1x1x8x128xf32> to vector<8x128xf32>
    %66 = vector.shape_cast %63 : vector<8x128xf32> to vector<1x1x8x128xf32>
    tpu.vector_store %arg7[%c0_41, %c2, %c0_42, %c0_43], %66 {strides = array<i32>} : memref<1x4x8x128xf32, #tpu.memory_space<vmem>>, vector<1x1x8x128xf32>,
    %cst_44 = arith.constant dense<0.000000e+00> : vector<8x128xf32>
    %67 = tpu.matmul %62, %51, %cst_44 {dimension_numbers = #tpu.dot_dimension_numbers<[1], [0], [0], [1], [0, 0, 1, 1], [], []>} : vector<8x8xf32>, vector<8x128xf32>, vector<8x128xf32> -> vector<8x128xf32>
    %c0_45 = arith.constant 0 : index
    %c256_46 = arith.constant 256 : index
    %68 = vector.load %arg9[%c0_45, %c256_46] : memref<8x512xf32, #tpu.memory_space<vmem>>, vector<8x128xf32>
    tpu.vector_store %arg9[%c0_45, %c256_46], %67 {strides = array<i32>} : memref<8x512xf32, #tpu.memory_space<vmem>>, vector<8x128xf32>,
    %c0_47 = arith.constant 0 : index
    %c1152 = arith.constant 1152 : index
    %69 = vector.load %arg8[%c0_47, %c1152] : memref<8x1536xf32, #tpu.memory_space<vmem>>, vector<8x128xf32>
    %c0_48 = arith.constant 0 : index
    %c1280 = arith.constant 1280 : index
    %70 = vector.load %arg8[%c0_48, %c1280] : memref<8x1536xf32, #tpu.memory_space<vmem>>, vector<8x128xf32>
    %c0_49 = arith.constant 0 : index
    %c1408 = arith.constant 1408 : index
    %71 = vector.load %arg8[%c0_49, %c1408] : memref<8x1536xf32, #tpu.memory_space<vmem>>, vector<8x128xf32>
    %cst_50 = arith.constant dense<0.000000e+00> : vector<8x8xf32>
    %72 = tpu.matmul %69, %70, %cst_50 {dimension_numbers = #tpu.dot_dimension_numbers<[1], [1], [0], [0], [0, 0, 1, 0], [], []>} : vector<8x128xf32>, vector<8x128xf32>, vector<8x8xf32> -> vector<8x8xf32>
    %cst_51 = arith.constant dense<0xFF800000> : vector<8xf32>
    %73 = vector.multi_reduction <maximumf>, %72, %cst_51 [1] : vector<8x8xf32> to vector<8xf32>
    %74 = vector.shape_cast %73 : vector<8xf32> to vector<8x1xf32>
    %75 = vector.broadcast %74 : vector<8x1xf32> to vector<8x8xf32>
    %76 = arith.subf %72, %75 : vector<8x8xf32>
    %77 = math.exp %76 : vector<8x8xf32>
    %cst_52 = arith.constant dense<0.000000e+00> : vector<8xf32>
    %78 = vector.multi_reduction <add>, %77, %cst_52 [1] : vector<8x8xf32> to vector<8xf32>
    %79 = vector.shape_cast %78 : vector<8xf32> to vector<8x1xf32>
    %80 = tpu.reciprocal %79 : vector<8x1xf32> -> vector<8x1xf32>
    %81 = vector.broadcast %80 : vector<8x1xf32> to vector<8x8xf32>
    %82 = arith.mulf %77, %81 : vector<8x8xf32>
    %83 = tpu.concatenate %82, %8 in 1 : vector<8x8xf32>, vector<8x120xf32> -> vector<8x128xf32>
    %c0_53 = arith.constant 0 : index
    %c3 = arith.constant 3 : index
    %c0_54 = arith.constant 0 : index
    %c0_55 = arith.constant 0 : index
    %84 = vector.load %arg7[%c0_53, %c3, %c0_54, %c0_55] : memref<1x4x8x128xf32, #tpu.memory_space<vmem>>, vector<1x1x8x128xf32>
    %85 = vector.shape_cast %84 : vector<1x1x8x128xf32> to vector<8x128xf32>
    %86 = vector.shape_cast %83 : vector<8x128xf32> to vector<1x1x8x128xf32>
    tpu.vector_store %arg7[%c0_53, %c3, %c0_54, %c0_55], %86 {strides = array<i32>} : memref<1x4x8x128xf32, #tpu.memory_space<vmem>>, vector<1x1x8x128xf32>,
    %cst_56 = arith.constant dense<0.000000e+00> : vector<8x128xf32>
    %87 = tpu.matmul %82, %71, %cst_56 {dimension_numbers = #tpu.dot_dimension_numbers<[1], [0], [0], [1], [0, 0, 1, 1], [], []>} : vector<8x8xf32>, vector<8x128xf32>, vector<8x128xf32> -> vector<8x128xf32>
    %c0_57 = arith.constant 0 : index
    %c384_58 = arith.constant 384 : index
    %88 = vector.load %arg9[%c0_57, %c384_58] : memref<8x512xf32, #tpu.memory_space<vmem>>, vector<8x128xf32>
    tpu.vector_store %arg9[%c0_57, %c384_58], %87 {strides = array<i32>} : memref<8x512xf32, #tpu.memory_space<vmem>>, vector<8x128xf32>,
    %c0_59 = arith.constant 0 : index
    %c0_60 = arith.constant 0 : index
    %89 = vector.load %arg9[%c0_59, %c0_60] : memref<8x512xf32, #tpu.memory_space<vmem>>, vector<8x512xf32>
    %c0_61 = arith.constant 0 : index
    %c0_62 = arith.constant 0 : index
    %90 = vector.load %arg3[%c0_61, %c0_62] : memref<512x32xf32, #tpu.memory_space<vmem>>, vector<512x32xf32>
    %cst_63 = arith.constant dense<0.000000e+00> : vector<8x32xf32>
    %91 = tpu.matmul %89, %90, %cst_63 {dimension_numbers = #tpu.dot_dimension_numbers<[1], [0], [0], [1], [0, 0, 1, 1], [], []>} : vector<8x512xf32>, vector<512x32xf32>, vector<8x32xf32> -> vector<8x32xf32>
    %c0_64 = arith.constant 0 : index
    %c0_65 = arith.constant 0 : index
    %92 = vector.load %arg5[%c0_64, %c0_65] : memref<1x32xf32, #tpu.memory_space<vmem>>, vector<1x32xf32>
    %93 = vector.broadcast %92 : vector<1x32xf32> to vector<8x32xf32>
    %94 = arith.addf %91, %93 : vector<8x32xf32>
    %c0_66 = arith.constant 0 : index
    %c0_67 = arith.constant 0 : index
    %c0_68 = arith.constant 0 : index
    %95 = vector.load %arg6[%c0_66, %c0_67, %c0_68] : memref<1x8x32xf32, #tpu.memory_space<vmem>>, vector<1x8x32xf32>
    %96 = vector.shape_cast %95 : vector<1x8x32xf32> to vector<8x32xf32>
    %97 = vector.shape_cast %94 : vector<8x32xf32> to vector<1x8x32xf32>
    tpu.vector_store %arg6[%c0_66, %c0_67, %c0_68], %97 {strides = array<i32>} : memref<1x8x32xf32, #tpu.memory_space<vmem>>, vector<1x8x32xf32>,
    return
  }
  func.func @transform_0(%arg0: i32) -> (i32, i32, i32) {
    %c0_i32 = arith.constant 0 : i32
    %c0_i32_0 = arith.constant 0 : i32
    %c0_i32_1 = arith.constant 0 : i32
    return %arg0, %c0_i32, %c0_i32_0 : i32, i32, i32
  }
  func.func @transform_1(%arg0: i32) -> (i32, i32) {
    %c0_i32 = arith.constant 0 : i32
    %c0_i32_0 = arith.constant 0 : i32
    %c0_i32_1 = arith.constant 0 : i32
    return %c0_i32, %c0_i32_0 : i32, i32
  }
  func.func @transform_2(%arg0: i32) -> (i32, i32) {
    %c0_i32 = arith.constant 0 : i32
    %c0_i32_0 = arith.constant 0 : i32
    %c0_i32_1 = arith.constant 0 : i32
    return %c0_i32, %c0_i32_0 : i32, i32
  }
  func.func @transform_3(%arg0: i32) -> (i32, i32) {
    %c0_i32 = arith.constant 0 : i32
    %c0_i32_0 = arith.constant 0 : i32
    %c0_i32_1 = arith.constant 0 : i32
    return %c0_i32, %c0_i32_0 : i32, i32
  }
  func.func @transform_4(%arg0: i32) -> (i32, i32) {
    %c0_i32 = arith.constant 0 : i32
    %c0_i32_0 = arith.constant 0 : i32
    %c0_i32_1 = arith.constant 0 : i32
    return %c0_i32, %c0_i32_0 : i32, i32
  }
  func.func @transform_5(%arg0: i32) -> (i32, i32, i32) {
    %c0_i32 = arith.constant 0 : i32
    %c0_i32_0 = arith.constant 0 : i32
    %c0_i32_1 = arith.constant 0 : i32
    return %arg0, %c0_i32, %c0_i32_0 : i32, i32, i32
  }
  func.func @transform_6(%arg0: i32) -> (i32, i32, i32, i32) {
    %c0_i32 = arith.constant 0 : i32
    %c0_i32_0 = arith.constant 0 : i32
    %c0_i32_1 = arith.constant 0 : i32
    %c0_i32_2 = arith.constant 0 : i32
    return %arg0, %c0_i32, %c0_i32_0, %c0_i32_1 : i32, i32, i32, i32
  }
}

</mosaic_0001>

<bundles_post_ra>
// kernel: tpu_custom_call.1
= control target key start
LH: loop header
LB: loop body
LE: loop exit
PB: predicated region body
PF: predicated region fallthrough
CT: control target
= control target key end

     0   :  { %12 = vsyncpa [#allocation5], 0  ;;  %s2862_s0 = inlined_call_operand.vmem [shape: f32[2,8,32], index: 0, kind: input, shape index: {}]   ;;  %s2863_s1 = inlined_call_operand.vmem [shape: f32[32,1536], index: 1, kind: input, shape index: {}]   ;;  %s2864_s2 = inlined_call_operand.vmem [shape: f32[512,32], index: 2, kind: input, shape index: {}]   ;;  %s2865_s3 = inlined_call_operand.vmem [shape: f32[1,1536], index: 3, kind: input, shape index: {}]   ;;  %s2866_s4 = inlined_call_operand.vmem [shape: f32[1,32], index: 4, kind: input, shape index: {}]   ;;  %s2867_s5 = inlined_call_operand.hbm [shape: f32[2,8,32], index: 5, kind: output, shape index: {0}]   ;;  %s2868_s6 = inlined_call_operand.hbm [shape: f32[2,4,8,128], index: 6, kind: output, shape index: {1}]  }
   0x1   :  { %14 = vsyncpa [#allocation5 + $0x1], 0 }
   0x2   :  { %15 = vsyncpa [#allocation7], 0 }
   0x3   :  { %17 = vsyncpa [#allocation7 + $0x1], 0  ;;  %s2267_s21 = smov 0   ;;  %s2269_s22 = smov 0  }
   0x4   :  { %s2271_s23 = smov 0   ;;  %s2273_s24 = smov 0  }
   0x5 LB: > { %s2288_s25 = sadd.s32 4294967295, %s2224_s24   ;;  %s1799_s26 = sadd.s32 4294967294, %s2224_s24   ;;  %s2224_s24 = sphi %s2273_s24, %s2874_s24   ;;  %s2220_s23 = sphi %s2271_s23, %s2873_s23   ;;  %s2216_s22 = sphi %s2269_s22, %s2872_s22   ;;  %s2212_s21 = sphi %s2267_s21, %s2871_s21  }
   0x6   : > { %s2292_s27 = sadd.s32 1, %s2224_s24   ;;  %s140_s28 = sadd.s32 1, %s2220_s23 }
   0x7   : > { %s137_s29 = ssub.s32 %s2224_s24, %s2292_s27  ;;  %p150_p0 = scmp.ne.s32.totalorder %s2220_s23, %s2216_s22 }
   0x8   : > { %p138_p1 = scmp.eq.s32.totalorder %s137_s29, 0  ;;  %p151_p2 = scmp.eq.s32.totalorder %s2288_s25, 1 }
   0x9   : > { %p156_p3 = scmp.ne.s32.totalorder %s2216_s22, %s2212_s21  ;;  %p157_p4 = scmp.eq.s32.totalorder %s1799_s26, 1 }
   0xa   : > { %s2303_s30 = scalar_select %p138_p1, %s2220_s23, %s140_s28  }
   0xb   : > { %p2305_p5 = por %p151_p2, %p150_p0  ;;  %p2309_p6 = por %p157_p4, %p156_p3 }
   0xc   : > { %p1802_p7 = scmp.ge.s32.totalorder %s2224_s24, 1  ;;  %p220_p8 = scmp.lt.s32.totalorder %s2224_s24, 3 }
   0xe   : > { %p221_p9 = pnand %p1802_p7, %p220_p8 }
   0xf   : > { %v260_v0 = vld [vmem:[%s2863_s1 + $0x8] sm:$0xff] (!%p221_p9)  ;;  %v262_v2 = vld [vmem:[%s2863_s1 + $0x18] sm:$0xff] (!%p221_p9)  ;;  %p254_p10 = scmp.lt.s32.totalorder (!%p221_p9), %s2288_s25, 1  ;;  %v259_v5 = vld [vmem:[%s2863_s1] sm:$0xff] (!%p221_p9)  ;;  %v2226_v7 = vmov (!%p221_p9), 0.0   ;;  %vm371_vm0 = vcmask (!%p221_p9), 261120  }
  0x10   : > { %224 = sbr.rel (%p221_p9) target bundleno = 1231 (0x4cf), region = 40  ;;  %v272_v1 = vld [vmem:[%s2863_s1 + $0x68] sm:$0xff] (!%p221_p9)  ;;  %v274_v4 = vld [vmem:[%s2863_s1 + $0x78] sm:$0xff] (!%p221_p9)  ;;  %v271_v6 = vld [vmem:[%s2863_s1 + $0x60] sm:$0xff] (!%p221_p9)  ;;  %439 = vmatprep.mubr.f32.mxu0 (!%p221_p9), %v2226_v7  ;;  %510 = vmatprep.mubr.f32.mxu1 (!%p221_p9), %v2226_v7  ;;  %vm2227_vm1 = vmmov (!%p221_p9), 0   ;;  %vm886_vm2 = vcmask (!%p221_p9), 64512  }
  0x11   : > { %v1954_v3 = vpack.c.bf16 (!%p221_p9), %v272_v1, %v260_v0  ;;  %v1962_v8 = vpack.c.bf16 (!%p221_p9), %v274_v4, %v262_v2  ;;  %v1956_v9 = vpack.c.bf16 (!%p221_p9), %v271_v6, %v259_v5  ;;  %v261_v10 = vld [vmem:[%s2863_s1 + $0x10] sm:$0xff] (!%p221_p9)  ;;  %v284_v12 = vld [vmem:[%s2863_s1 + $0xc8] sm:$0xff] (!%p221_p9)  ;;  %v286_v15 = vld [vmem:[%s2863_s1 + $0xd8] sm:$0xff] (!%p221_p9)  ;;  %s2624_s13 = sand.u32 (!%p221_p9), 1, %s2216_s22   ;;  %s1827_s19 = sshll.u32 (!%p221_p9), %s2288_s25, 9 }
  0x12   : > { %v273_v11 = vld [vmem:[%s2863_s1 + $0x70] sm:$0xff] (!%p221_p9)  ;;  %v296_v14 = vld [vmem:[%s2863_s1 + $0x128] sm:$0xff] (!%p221_p9)  ;;  %v298_v16 = vld [vmem:[%s2863_s1 + $0x138] sm:$0xff] (!%p221_p9)  ;;  %s1804_s14 = sshll.u32 (!%p221_p9), %s2624_s13, 5  ;;  %s2784_s26 = scalar_lea.hbm (!%p221_p9), %s2868_s6, %s1827_s19 }
  0x13   : > { %1955 = vmatprep.subr.bf16.mxu0 (!%p221_p9), %v1954_v3  ;;  %v1964_v13 = vpack.c.bf16 (!%p221_p9), %v273_v11, %v261_v10  ;;  %1963 = vmatprep.subr.bf16.mxu1 (!%p221_p9), %v1962_v8  ;;  %v1958_v17 = vpack.c.bf16 (!%p221_p9), %v296_v14, %v284_v12  ;;  %v1966_v18 = vpack.c.bf16 (!%p221_p9), %v298_v16, %v286_v15  ;;  %v283_v19 = vld [vmem:[%s2863_s1 + $0xc0] sm:$0xff] (!%p221_p9)  ;;  %v285_v21 = vld [vmem:[%s2863_s1 + $0xd0] sm:$0xff] (!%p221_p9)  ;;  %v264_v24 = vld [vmem:[%s2863_s1 + $0x28] sm:$0xff] (!%p221_p9)  ;;  %v311_v11 = vlaneseq (!%p221_p9)  ;;  %s2634_s15 = scalar_lea.vmem (!%p221_p9), [#allocation6], %s1804_s14  ;;  %s1679_s28 = scalar_lea.sflag (!%p221_p9), [#allocation7], %s2624_s13 }
  0x14   : > { %1957 = vmatpush1.bf16.msra.mxu0 (!%p221_p9), %v1956_v9  ;;  %v295_v20 = vld [vmem:[%s2863_s1 + $0x120] sm:$0xff] (!%p221_p9)  ;;  %v297_v23 = vld [vmem:[%s2863_s1 + $0x130] sm:$0xff] (!%p221_p9)  ;;  %v276_v25 = vld [vmem:[%s2863_s1 + $0x88] sm:$0xff] (!%p221_p9)  ;;  %s1705_s18 = sshll.u32 (!%p221_p9), %s2634_s15, 4  ;;  %s2228_s9 = smov (!%p221_p9), [#allocation6]   ;;  %s2779_s18 = int_to_ptr.vmem [resolvable:$true] %s1705_s18 }
  0x15   : > { %1965 = vmatpush1.bf16.msra.mxu1 (!%p221_p9), %v1964_v13  ;;  %v1960_v22 = vpack.c.bf16 (!%p221_p9), %v295_v20, %v283_v19  ;;  %1959 = vmatprep.subr.bf16.mxu0 (!%p221_p9), %v1958_v17  ;;  %v1968_v26 = vpack.c.bf16 (!%p221_p9), %v297_v23, %v285_v21  ;;  %v1970_v28 = vpack.c.bf16 (!%p221_p9), %v276_v25, %v264_v24  ;;  %v266_v29 = vld [vmem:[%s2863_s1 + $0x38] sm:$0xff] (!%p221_p9)  ;;  %v263_v32 = vld [vmem:[%s2863_s1 + $0x20] sm:$0xff] (!%p221_p9)  ;;  %v265_v34 = vld [vmem:[%s2863_s1 + $0x30] sm:$0xff] (!%p221_p9)  ;;  %v2490_v12 = vshrl.u32 (!%p221_p9), %v311_v11, 7  ;;  %s2130_s29 = scalar_lea.vmem (!%p221_p9), %s2779_s18, 512 }
  0x16   : > { %1967 = vmatprep.subr.bf16.mxu1 (!%p221_p9), %v1966_v18  ;;  %v278_v30 = vld [vmem:[%s2863_s1 + $0x98] sm:$0xff] (!%p221_p9)  ;;  %v275_v33 = vld [vmem:[%s2863_s1 + $0x80] sm:$0xff] (!%p221_p9)  ;;  %v277_v36 = vld [vmem:[%s2863_s1 + $0x90] sm:$0xff] (!%p221_p9)  ;;  %p2131_p11 = scmp.ne.s32.totalorder (!%p221_p9), %s2779_s18, %s2130_s29 }
  0x17   : > { %s255_s12 = scalar_select %p254_p10, %s2288_s25, 1  ;;  %v1978_v31 = vpack.c.bf16 %v278_v30, %v266_v29  ;;  %v1972_v35 = vpack.c.bf16 %v275_v33, %v263_v32  ;;  %v288_v37 = vld [vmem:[%s2863_s1 + $0xe8] sm:$0xff]  ;;  %v1980_v39 = vpack.c.bf16 %v277_v36, %v265_v34  ;;  %v290_v41 = vld [vmem:[%s2863_s1 + $0xf8] sm:$0xff]  ;;  %v287_v43 = vld [vmem:[%s2863_s1 + $0xe0] sm:$0xff]  ;;  %v325_v13 = vsub.s32 3, %v2490_v12 }
  0x18   : > { %1961 = vmatpush1.bf16.msra.mxu0 %v1960_v22  ;;  %v300_v38 = vld [vmem:[%s2863_s1 + $0x148] sm:$0xff]  ;;  %v302_v42 = vld [vmem:[%s2863_s1 + $0x158] sm:$0xff]  ;;  %v299_v45 = vld [vmem:[%s2863_s1 + $0x140] sm:$0xff]  ;;  %v321_v16 = vsub.s32 2, %v2490_v12  ;;  %v317_v17 = vsub.s32 1, %v2490_v12  ;;  %v313_v19 = vsub.s32 0, %v2490_v12  ;;  %p2132_p12 = pnand %p2131_p11, %p2305_p5 }
  0x19   : > { %s1805_s10 = sshll.u32 %s255_s12, 3  ;;  %1969 = vmatpush1.bf16.msra.mxu1 %v1968_v26  ;;  %1971 = vmatprep.subr.bf16.mxu0 %v1970_v28  ;;  %v1974_v40 = vpack.c.bf16 %v300_v38, %v288_v37  ;;  %v1982_v44 = vpack.c.bf16 %v302_v42, %v290_v41  ;;  %v289_v46 = vld [vmem:[%s2863_s1 + $0xf0] sm:$0xff]  ;;  %v270_v48 = vld [vmem:[%s2863_s1 + $0x58] sm:$0xff]  ;;  %v1976_v50 = vpack.c.bf16 %v299_v45, %v287_v43  ;;  %v268_v51 = vld [vmem:[%s2863_s1 + $0x48] sm:$0xff]  ;;  %v329_v26 = vsub.s32 4, %v2490_v12 }
  0x1a   : > { %s257_s16 = scalar_lea.vmem %s2862_s0, %s1805_s10  ;;  %1979 = vmatprep.subr.bf16.mxu1 %v1978_v31  ;;  %v301_v47 = vld [vmem:[%s2863_s1 + $0x150] sm:$0xff]  ;;  %v282_v49 = vld [vmem:[%s2863_s1 + $0xb8] sm:$0xff]  ;;  %v280_v52 = vld [vmem:[%s2863_s1 + $0xa8] sm:$0xff]  ;;  %v341_v32 = vsub.s32 7, %v2490_v12  ;;  %p2133_p13 = pneg %p2132_p12 }
  0x1b   : > { %v2376_v27 = vld [vmem:[%s257_s16] sm:$0xff]  ;;  %v1984_v53 = vpack.c.bf16 %v301_v47, %v289_v46  ;;  %v1986_v54 = vpack.c.bf16 %v280_v52, %v268_v51  ;;  %v1994_v57 = vpack.c.bf16 %v282_v49, %v270_v48  ;;  %v269_v58 = vld [vmem:[%s2863_s1 + $0x50] sm:$0xff]  ;;  %v294_v60 = vld [vmem:[%s2863_s1 + $0x118] sm:$0xff]  ;;  %s2134_s10 = sshll.u32 %s2228_s9, 4  ;;  %s2135_s10 = int_to_ptr.vmem [resolvable:$false] %s2134_s10 }
  0x1c   : > { %1806 = vmatmul.mubr.msk.f32.vlgmr.msra.gmra.mrb[0].mxu0 %vm371_vm0, %v2376_v27  ;;  %1807 = vmatmul.mubr.msk.f32.vlgmr.msra.gmra.mrb[0].mxu1 %vm371_vm0, %v2376_v27  ;;  %v267_v55 = vld [vmem:[%s2863_s1 + $0x40] sm:$0xff]  ;;  %v281_v59 = vld [vmem:[%s2863_s1 + $0xb0] sm:$0xff]  ;;  %v306_v61 = vld [vmem:[%s2863_s1 + $0x178] sm:$0xff]  ;;  %p2137_p0 = scmp.lt.s32.totalorder %s2779_s18, %s2135_s10 }
  0x1d   : > { %1973 = vmatpush1.bf16.msra.mxu0 %v1972_v35  ;;  %1981 = vmatpush1.bf16.msra.mxu1 %v1980_v39  ;;  %v279_v56 = vld [vmem:[%s2863_s1 + $0xa0] sm:$0xff]  ;;  %v292_v62 = vld [vmem:[%s2863_s1 + $0x108] sm:$0xff]  ;;  %v1996_v1 = vpack.c.bf16 %v281_v59, %v269_v58  ;;  %v1998_v5 = vpack.c.bf16 %v306_v61, %v294_v60  ;;  %v293_v6 = vld [vmem:[%s2863_s1 + $0x110] sm:$0xff]  ;;  %v337_v35 = vsub.s32 6, %v2490_v12 }
  0x1e   : > { %1975 = vmatprep.subr.bf16.mxu0 %v1974_v40  ;;  %1983 = vmatprep.subr.bf16.mxu1 %v1982_v44  ;;  %v304_v63 = vld [vmem:[%s2863_s1 + $0x168] sm:$0xff]  ;;  %v1988_v0 = vpack.c.bf16 %v279_v56, %v267_v55  ;;  %v291_v3 = vld [vmem:[%s2863_s1 + $0x100] sm:$0xff]  ;;  %v305_v8 = vld [vmem:[%s2863_s1 + $0x170] sm:$0xff] }
  0x1f   : > { %581 = vmatprep.mubr.f32.mxu0 %v2226_v7  ;;  %652 = vmatprep.mubr.f32.mxu1 %v2226_v7  ;;  %v1990_v2 = vpack.c.bf16 %v304_v63, %v292_v62  ;;  %v303_v4 = vld [vmem:[%s2863_s1 + $0x160] sm:$0xff]  ;;  %v2000_v10 = vpack.c.bf16 %v305_v8, %v293_v6  ;;  %v308_v14 = vld [vmem:[%s2865_s3 + $0x8] sm:$0xf] }
  0x20   : > { %v1992_v9 = vpack.c.bf16 %v303_v4, %v291_v3  ;;  %v358_v15 = vrot.slane %v308_v14, %v325_v13  ;;  %v2501_v18 = vld [vmem:[%s2865_s3] sm:$0xff]  ;;  %v346_v44 = vrot.slane %v308_v14, %v313_v19  ;;  %v354_v45 = vrot.slane %v308_v14, %v321_v16 }
  0x21   : > { %1977 = vmatpush1.bf16.msra.mxu0 %v1976_v50  ;;  %1985 = vmatpush1.bf16.msra.mxu1 %v1984_v53  ;;  %v322_v20 = vrot.slane %v2501_v18, %v321_v16  ;;  %v318_v21 = vrot.slane %v2501_v18, %v317_v17  ;;  %v314_v23 = vrot.slane %v2501_v18, %v313_v19 }
  0x22   : > { %1987 = vmatprep.subr.bf16.mxu0 %v1986_v54  ;;  %1995 = vmatprep.subr.bf16.mxu1 %v1994_v57  ;;  %v330_v31 = vrot.slane %v2501_v18, %v329_v26  ;;  %v326_v33 = vrot.slane %v2501_v18, %v325_v13  ;;  %v342_v39 = vrot.slane %v2501_v18, %v341_v32  ;;  %v1479_v32 = vld [vmem:[%s2864_s2 + $0x90] sm:$0xff] }
  0x23   : > { %v338_v42 = vrot.slane %v2501_v18, %v337_v35  ;;  %v350_v46 = vrot.slane %v308_v14, %v317_v17 }
  0x24   : > { %1808 = vmatmul.mubr.msk.f32.vlgmr.msra.gmra.mrb[2].mxu0 %vm371_vm0, %v2376_v27  ;;  %1809 = vmatmul.mubr.msk.f32.vlgmr.msra.gmra.mrb[2].mxu1 %vm371_vm0, %v2376_v27 }
  0x25   : > { %1989 = vmatpush1.bf16.msra.mxu0 %v1988_v0  ;;  %1997 = vmatpush1.bf16.msra.mxu1 %v1996_v1 }
  0x26   : > { %1991 = vmatprep.subr.bf16.mxu0 %v1990_v2  ;;  %1999 = vmatprep.subr.bf16.mxu1 %v1998_v5 }
  0x27   : > { %794 = vmatprep.mubr.f32.mxu1 %v2226_v7  ;;  %723 = vmatprep.mubr.f32.mxu0 %v2226_v7 }
  0x29   : > { %1993 = vmatpush1.bf16.msra.mxu0 %v1992_v9  ;;  %2001 = vmatpush1.bf16.msra.mxu1 %v2000_v10 }
  0x2a   : > { %1914 = vmatprep.subr.mxu0 %v2226_v7  ;;  %1919 = vmatprep.subr.mxu1 %v2226_v7 }
  0x2c   : > { %1810 = vmatmul.mubr.msk.f32.vlgmr.msra.gmra.mrb[4].mxu0 %vm371_vm0, %v2376_v27  ;;  %1811 = vmatmul.mubr.msk.f32.vlgmr.msra.gmra.mrb[4].mxu1 %vm371_vm0, %v2376_v27 }
  0x2d   : > { %1916 = vmatprep.mubr.msk.f32.mxu0 %vm2227_vm1, %v2226_v7  ;;  %1921 = vmatprep.mubr.msk.f32.mxu1 %vm2227_vm1, %v2226_v7 }
  0xef   : > { %v441_v22 = vpop.f32.mrb[0].mxu0  ;;  %v512_v24 = vpop.f32.mrb[0].mxu1 }
  0xf0   : > { %v443_v25 = vpop.f32.mrb[1].mxu0  ;;  %v513_v27 = vadd.f32 %v512_v24, %v322_v20  ;;  %v514_v29 = vpop.f32.mrb[1].mxu1  ;;  %v442_v30 = vadd.f32 %v441_v22, %v314_v23 }
  0xf1   : > { %v444_v28 = vadd.f32 %v443_v25, %v318_v21  ;;  %v515_v41 = vadd.f32 %v514_v29, %v326_v33  ;;  %v1461_v29 = vld [vmem:[%s2864_s2] sm:$0xff]  ;;  %v1480_v33 = vld [vmem:[%s2864_s2 + $0x98] sm:$0xff] }
  0xf2   : > { %1920 = vmatpush3.msra.mxu1 %v513_v27  ;;  %v1477_v27 = vld [vmem:[%s2864_s2 + $0x80] sm:$0xff]  ;;  %v2006_v35 = vpack.c.bf16 %v1480_v33, %v1479_v32 }
  0xf3   : > { %1915 = vmatpush3.xpose.msra.mxu0 %v444_v28  ;;  %1929 = vmatprep.subr.mxu1 %v2226_v7  ;;  %v1478_v28 = vld [vmem:[%s2864_s2 + $0x88] sm:$0xff]  ;;  %v1497_v33 = vld [vmem:[%s2864_s2 + $0x120] sm:$0xff] }
  0xf4   : > { %1924 = vmatprep.subr.mxu0 %v2226_v7 }
  0xf6   : > { %1917 = vmatmul.mubr.f32.vlgmr.msra.gmra.mrb[6].mxu0 %v442_v30  ;;  %v2002_v30 = vpack.c.bf16 %v1478_v28, %v1477_v27 }
  0xf7   : > { %v583_v34 = vpop.f32.mrb[2].mxu0  ;;  %1926 = vmatprep.mubr.msk.f32.mxu0 %vm2227_vm1, %v2226_v7  ;;  %v654_v37 = vpop.f32.mrb[2].mxu1 }
  0xf8   : > { %v584_v36 = vadd.f32 %v583_v34, %v330_v31  ;;  %v2516_v38 = vpop.f32.mrb[3].mxu0  ;;  %v656_v40 = vpop.f32.mrb[3].mxu1  ;;  %v655_v47 = vadd.f32 %v654_v37, %v338_v42  ;;  %v1462_v31 = vld [vmem:[%s2864_s2 + $0x8] sm:$0xff]  ;;  %v1464_v37 = vld [vmem:[%s2864_s2 + $0x18] sm:$0xff] }
  0xf9   : > { %v657_v43 = vadd.f32 %v656_v40, %v342_v39  ;;  %v2004_v34 = vpack.c.bf16 %v1462_v31, %v1461_v29  ;;  %v1481_v39 = vld [vmem:[%s2864_s2 + $0xa0] sm:$0xff]  ;;  %v1482_v40 = vld [vmem:[%s2864_s2 + $0xa8] sm:$0xff]  ;;  %v1495_v29 = vld [vmem:[%s2864_s2 + $0x110] sm:$0xff] }
  0xfa   : > { %1925 = vmatpush3.xpose.msra.mxu0 %v584_v36  ;;  %v1463_v36 = vld [vmem:[%s2864_s2 + $0x10] sm:$0xff]  ;;  %v2010_v42 = vpack.c.bf16 %v1482_v40, %v1481_v39 }
  0xfb   : > { %1934 = vmatprep.subr.mxu0 %v2226_v7  ;;  %v1499_v40 = vld [vmem:[%s2864_s2 + $0x130] sm:$0xff] }
  0xfd   : > { %1927 = vmatmul.mubr.f32.vlgmr.msra.gmra.mrb[8].mxu0 %v515_v41  ;;  %v2008_v41 = vpack.c.bf16 %v1464_v37, %v1463_v36  ;;  %v1516_v36 = vld [vmem:[%s2864_s2 + $0x1b8] sm:$0xff] }
  0xfe   : > { %1935 = vmatpush3.xpose.msra.mxu0 %v657_v43  ;;  %1936 = vmatprep.mubr.msk.f32.mxu0 %vm2227_vm1, %v2226_v7  ;;  %v1465_v43 = vld [vmem:[%s2864_s2 + $0x20] sm:$0xff] }
  0xff   : > { %v725_v48 = vpop.f32.mrb[4].mxu0  ;;  %1944 = vmatprep.subr.mxu0 %v2226_v7  ;;  %v796_v49 = vpop.f32.mrb[4].mxu1 }
 0x100   : > { %v2524_v50 = vadd.f32 %v725_v48, %v346_v44  ;;  %v727_v51 = vpop.f32.mrb[5].mxu0  ;;  %v797_v52 = vadd.f32 %v796_v49, %v354_v45  ;;  %v798_v53 = vpop.f32.mrb[5].mxu1  ;;  %v1466_v44 = vld [vmem:[%s2864_s2 + $0x28] sm:$0xff]  ;;  %v1483_v45 = vld [vmem:[%s2864_s2 + $0xb0] sm:$0xff] }
 0x101   : > { %1937 = vmatmul.mubr.f32.vlgmr.msra.gmra.mrb[10].mxu0 %v655_v47  ;;  %v2526_v54 = vadd.f32 %v798_v53, %v358_v15  ;;  %v728_v55 = vadd.f32 %v727_v51, %v350_v46  ;;  %v1484_v46 = vld [vmem:[%s2864_s2 + $0xb8] sm:$0xff]  ;;  %v2012_v47 = vpack.c.bf16 %v1466_v44, %v1465_v43  ;;  %v1467_v49 = vld [vmem:[%s2864_s2 + $0x30] sm:$0xff]  ;;  %v1486_v53 = vld [vmem:[%s2864_s2 + $0xc8] sm:$0xff] }
 0x102   : > { %1946 = vmatprep.mubr.msk.f32.mxu0 %vm2227_vm1, %v2226_v7  ;;  %1945 = vmatpush3.xpose.msra.mxu0 %v797_v52  ;;  %v2014_v48 = vpack.c.bf16 %v1484_v46, %v1483_v45  ;;  %v1468_v51 = vld [vmem:[%s2864_s2 + $0x38] sm:$0xff]  ;;  %v1485_v52 = vld [vmem:[%s2864_s2 + $0xc0] sm:$0xff]  ;;  %v1490_v44 = vld [vmem:[%s2864_s2 + $0xe8] sm:$0xff] }
 0x103   : > { %2003 = vmatprep.subr.bf16.mxu0 %v2002_v30  ;;  %v1496_v30 = vld [vmem:[%s2864_s2 + $0x118] sm:$0xff]  ;;  %v1489_v43 = vld [vmem:[%s2864_s2 + $0xe0] sm:$0xff] }
 0x104   : > { %v1517_v45 = vld [vmem:[%s2864_s2 + $0x1c0] sm:$0xff]  ;;  %v2026_v46 = vpack.c.bf16 %v1490_v44, %v1489_v43 }
 0x105   : > { %1947 = vmatmul.mubr.f32.vlgmr.msra.gmra.mrb[12].mxu0 %v728_v55  ;;  %v2016_v55 = vpack.c.bf16 %v1468_v51, %v1467_v49  ;;  %v1474_v49 = vld [vmem:[%s2864_s2 + $0x68] sm:$0xff] }
 0x106   : > { %2005 = vmatpush3.bf16.msra.mxu0 %v2004_v34  ;;  %v1498_v34 = vld [vmem:[%s2864_s2 + $0x128] sm:$0xff] }
 0x107   : > { %2007 = vmatprep.subr.bf16.mxu0 %v2006_v35  ;;  %v1515_v35 = vld [vmem:[%s2864_s2 + $0x1b0] sm:$0xff]  ;;  %v2044_v37 = vpack.c.bf16 %v1498_v34, %v1497_v33 }
 0x108   : > { %v2046_v39 = vpack.c.bf16 %v1516_v36, %v1515_v35 }
 0x10a   : > { %2009 = vmatpush3.bf16.msra.mxu0 %v2008_v41  ;;  %v1500_v41 = vld [vmem:[%s2864_s2 + $0x138] sm:$0xff] }
 0x10b   : > { %2011 = vmatprep.subr.bf16.mxu0 %v2010_v42  ;;  %v2048_v42 = vpack.c.bf16 %v1500_v41, %v1499_v40 }
 0x10e   : > { %2013 = vmatpush3.bf16.msra.mxu0 %v2012_v47  ;;  %v1518_v47 = vld [vmem:[%s2864_s2 + $0x1c8] sm:$0xff] }
 0x10f   : > { %2015 = vmatprep.subr.bf16.mxu0 %v2014_v48  ;;  %v1473_v48 = vld [vmem:[%s2864_s2 + $0x60] sm:$0xff]  ;;  %v2050_v51 = vpack.c.bf16 %v1518_v47, %v1517_v45 }
 0x112   : > { %2017 = vmatpush3.bf16.msra.mxu0 %v2016_v55  ;;  %v1502_v55 = vld [vmem:[%s2864_s2 + $0x148] sm:$0xff] }
 0x1c9   : > { %v882_v56 = vpop.f32.mrb[6].mxu0 }
 0x1ca   : > { %v1918_v57 = vpop.f32.mrb[7].mxu0  ;;  %v887_v58 = vsel %vm886_vm2, %v882_v56, -inf }
 0x1cb   : > { %888 = vmax.xlane.f32.xlu0 %v887_v58  ;;  %v1469_v57 = vld [vmem:[%s2864_s2 + $0x40] sm:$0xff]  ;;  %v1470_v58 = vld [vmem:[%s2864_s2 + $0x48] sm:$0xff] }
 0x1d0   : > { %v1043_v59 = vpop.f32.mrb[8].mxu0 }
 0x1d1   : > { %v1928_v60 = vpop.f32.mrb[9].mxu0  ;;  %v1047_v61 = vsel %vm886_vm2, %v1043_v59, -inf }
 0x1d2   : > { %1048 = vmax.xlane.f32.xlu0 %v1047_v61  ;;  %v1488_v60 = vld [vmem:[%s2864_s2 + $0xd8] sm:$0xff]  ;;  %v2020_v61 = vpack.c.bf16 %v1470_v58, %v1469_v57 }
 0x1d3   : > { %v1492_v58 = vld [vmem:[%s2864_s2 + $0xf8] sm:$0xff] }
 0x1d4   : > { %v1204_v62 = vpop.f32.mrb[10].mxu0 }
 0x1d5   : > { %v1938_v63 = vpop.f32.mrb[11].mxu0  ;;  %v1208_v0 = vsel %vm886_vm2, %v1204_v62, -inf }
 0x1d6   : > { %1209 = vmax.xlane.f32.xlu1 %v1208_v0  ;;  %v1471_v63 = vld [vmem:[%s2864_s2 + $0x50] sm:$0xff]  ;;  %v1472_v0 = vld [vmem:[%s2864_s2 + $0x58] sm:$0xff] }
 0x1d8   : > { %v1365_v1 = vpop.f32.mrb[12].mxu0 }
 0x1d9   : > { %v1948_v2 = vpop.f32.mrb[13].mxu0  ;;  %v1369_v3 = vsel %vm886_vm2, %v1365_v1, -inf }
 0x1da   : > { %1370 = vmax.xlane.f32.xlu1 %v1369_v3  ;;  %v333_v3 = vsub.s32 5, %v2490_v12 }
 0x258   : > { %v889_v4 = vpop.xlane.xlu0 %888 }
 0x259   : > { %v890_v5 = vsub.f32 %v882_v56, %v889_v4  ;;  %v2018_v56 = vpack.c.bf16 %v1486_v53, %v1485_v52  ;;  %v2028_v52 = vpack.c.bf16 %v1474_v49, %v1473_v48  ;;  %v1501_v53 = vld [vmem:[%s2864_s2 + $0x140] sm:$0xff] }
 0x25a   : > { %v2052_v57 = vpack.c.bf16 %v1502_v55, %v1501_v53 }
 0x25b   : > { %v891_v6 = vmul.f32 1.442695, %v890_v5  ;;  %2019 = vmatprep.subr.bf16.mxu0 %v2018_v56  ;;  %v334_v5 = vrot.slane %v2501_v18, %v333_v3  ;;  %v1491_v56 = vld [vmem:[%s2864_s2 + $0xf0] sm:$0xff]  ;;  %v1504_v3 = vld [vmem:[%s2864_s2 + $0x158] sm:$0xff] }
 0x25c   : > { %2021 = vmatpush3.bf16.msra.mxu0 %v2020_v61  ;;  %v2030_v61 = vpack.c.bf16 %v1492_v58, %v1491_v56 }
 0x25d   : > { %2114 = vpow2.f32 %v891_v6 }
 0x25f   : > { %v1049_v8 = vpop.xlane.xlu0 %1048 }
 0x260   : > { %v1050_v9 = vsub.f32 %v1043_v59, %v1049_v8  ;;  %v1487_v59 = vld [vmem:[%s2864_s2 + $0xd0] sm:$0xff] }
 0x262   : > { %v1051_v10 = vmul.f32 1.442695, %v1050_v9 }
 0x263   : > { %v1210_v11 = vpop.xlane.xlu1 %1209 }
 0x264   : > { %2116 = vpow2.f32 %v1051_v10  ;;  %v1211_v13 = vsub.f32 %v1204_v62, %v1210_v11  ;;  %v2022_v62 = vpack.c.bf16 %v1488_v60, %v1487_v59  ;;  %v586_v10 = vadd.f32 %v2516_v38, %v334_v5  ;;  %v1519_v59 = vld [vmem:[%s2864_s2 + $0x1d0] sm:$0xff]  ;;  %v1520_v60 = vld [vmem:[%s2864_s2 + $0x1d8] sm:$0xff]  ;;  %v1521_v5 = vld [vmem:[%s2864_s2 + $0x1e0] sm:$0xff] }
 0x266   : > { %v1212_v14 = vmul.f32 1.442695, %v1211_v13  ;;  %2023 = vmatprep.subr.bf16.mxu0 %v2022_v62  ;;  %v1509_v13 = vld [vmem:[%s2864_s2 + $0x180] sm:$0xff]  ;;  %v2054_v62 = vpack.c.bf16 %v1520_v60, %v1519_v59 }
 0x267   : > { %v2534_v15 = vpop.eup %2114  ;;  %v1371_v16 = vpop.xlane.xlu1 %1370 }
 0x268   : > { %2118 = vpow2.f32 %v1212_v14  ;;  %v893_v17 = vsel %vm886_vm2, %v2534_v15, 0.0  ;;  %v1372_v19 = vsub.f32 %v1365_v1, %v1371_v16  ;;  %v2024_v1 = vpack.c.bf16 %v1472_v0, %v1471_v63  ;;  %v1510_v14 = vld [vmem:[%s2864_s2 + $0x188] sm:$0xff]  ;;  %v1475_v63 = vld [vmem:[%s2864_s2 + $0x70] sm:$0xff]  ;;  %v1476_v0 = vld [vmem:[%s2864_s2 + $0x78] sm:$0xff] }
 0x269   : > { %894 = vadd.xlane.f32.xlu0 %v893_v17 }
 0x26a   : > { %v1373_v20 = vmul.f32 1.442695, %v1372_v19  ;;  %2025 = vmatpush3.bf16.msra.mxu0 %v2024_v1  ;;  %v2034_v19 = vpack.c.bf16 %v1510_v14, %v1509_v13  ;;  %v1503_v1 = vld [vmem:[%s2864_s2 + $0x150] sm:$0xff]  ;;  %v1508_v14 = vld [vmem:[%s2864_s2 + $0x178] sm:$0xff] }
 0x26b   : > { %2027 = vmatprep.subr.bf16.mxu0 %v2026_v46  ;;  %v1507_v13 = vld [vmem:[%s2864_s2 + $0x170] sm:$0xff] }
 0x26c   : > { %2120 = vpow2.f32 %v1373_v20  ;;  %v1493_v20 = vld [vmem:[%s2864_s2 + $0x100] sm:$0xff] }
 0x26e   : > { %v2538_v21 = vpop.eup %2116  ;;  %2029 = vmatpush3.bf16.msra.mxu0 %v2028_v52 }
 0x26f   : > { %v1053_v22 = vsel %vm886_vm2, %v2538_v21, 0.0  ;;  %2031 = vmatprep.subr.bf16.mxu0 %v2030_v61 }
 0x270   : > { %1054 = vadd.xlane.f32.xlu1 %v1053_v22 }
 0x272   : > { %v2542_v23 = vpop.eup %2118 }
 0x273   : > { %v1214_v24 = vsel %vm886_vm2, %v2542_v23, 0.0 }
 0x274   : > { %1215 = vadd.xlane.f32.xlu0 %v1214_v24 }
 0x276   : > { %v2546_v25 = vpop.eup %2120 }
 0x277   : > { %v1375_v26 = vsel %vm886_vm2, %v2546_v25, 0.0 }
 0x278   : > { %1376 = vadd.xlane.f32.xlu1 %v1375_v26 }
 0x2f6   : > { %v895_v2 = vpop.xlane.xlu0 %894 }
 0x2f7   : > { %2122 = vrcp.f32 %v895_v2  ;;  %v2032_v2 = vpack.c.bf16 %v1476_v0, %v1475_v63 }
 0x2f9   : > { %2033 = vmatpush3.bf16.msra.mxu0 %v2032_v2 }
 0x2fd   : > { %v1055_v4 = vpop.xlane.xlu1 %1054 }
 0x2fe   : > { %2124 = vrcp.f32 %v1055_v4  ;;  %v2056_v4 = vpack.c.bf16 %v1504_v3, %v1503_v1 }
 0x301   : > { %v2123_v6 = vpop.eup %2122  ;;  %v1216_v8 = vpop.xlane.xlu0 %1215 }
 0x302   : > { %v897_v9 = vmul.f32 %v2123_v6, %v2534_v15  ;;  %2126 = vrcp.f32 %v1216_v8  ;;  %v1522_v6 = vld [vmem:[%s2864_s2 + $0x1e8] sm:$0xff] }
 0x303   : > { %v2058_v8 = vpack.c.bf16 %v1522_v6, %v1521_v5 }
 0x304   : > { %v898_v11 = vsel %vm886_vm2, %v897_v9, 0.0  ;;  %1922 = vmatmul.mubr.msk.f32.vlgmr.msra.gmra.mrb[6].mxu1 %vm886_vm2, %v897_v9  ;;  %v1505_v9 = vld [vmem:[%s2864_s2 + $0x160] sm:$0xff] }
 0x305   : > { %1930 = vmatpush3.msra.mxu1 %v586_v10  ;;  %1931 = vmatprep.mubr.msk.f32.mxu1 %vm2227_vm1, %v2226_v7  ;;  %899 = vst [vmem:[%s2634_s15] sm:$0xff] %v898_v11  ;;  %v1377_v12 = vpop.xlane.xlu1 %1376  ;;  %v1506_v10 = vld [vmem:[%s2864_s2 + $0x168] sm:$0xff] }
 0x306   : > { %1939 = vmatprep.subr.mxu1 %v2226_v7  ;;  %2128 = vrcp.f32 %v1377_v12  ;;  %v2060_v11 = vpack.c.bf16 %v1506_v10, %v1505_v9  ;;  %v1523_v12 = vld [vmem:[%s2864_s2 + $0x1f0] sm:$0xff] }
 0x308   : > { %v2125_v18 = vpop.eup %2124 }
 0x309   : > { %v1057_v38 = vmul.f32 %v2125_v18, %v2538_v21  ;;  %v1494_v21 = vld [vmem:[%s2864_s2 + $0x108] sm:$0xff]  ;;  %v1524_v18 = vld [vmem:[%s2864_s2 + $0x1f8] sm:$0xff] }
 0x30a   : > { %v2036_v26 = vpack.c.bf16 %v1494_v21, %v1493_v20 }
 0x30b   : > { %v1058_v15 = vsel %vm886_vm2, %v1057_v38, 0.0  ;;  %1932 = vmatmul.mubr.msk.f32.vlgmr.msra.gmra.mrb[8].mxu1 %vm886_vm2, %v1057_v38  ;;  %v2062_v38 = vpack.c.bf16 %v1524_v18, %v1523_v12 }
 0x30c   : > { %v2127_v16 = vpop.eup %2126  ;;  %1940 = vmatpush3.msra.mxu1 %v2524_v50  ;;  %1941 = vmatprep.mubr.msk.f32.mxu1 %vm2227_vm1, %v2226_v7  ;;  %1813 = vst [vmem:[%s2634_s15 + $0x8] sm:$0xff] %v1058_v15  ;;  %v1511_v50 = vld [vmem:[%s2864_s2 + $0x190] sm:$0xff]  ;;  %v2064_v15 = vpack.c.bf16 %v1508_v14, %v1507_v13 }
 0x30d   : > { %v1218_v17 = vmul.f32 %v2127_v16, %v2542_v23  ;;  %1949 = vmatprep.subr.mxu1 %v2226_v7  ;;  %v1512_v23 = vld [vmem:[%s2864_s2 + $0x198] sm:$0xff] }
 0x30e   : > { %v2038_v28 = vpack.c.bf16 %v1512_v23, %v1511_v50 }
 0x30f   : > { %v1219_v22 = vsel %vm886_vm2, %v1218_v17, 0.0  ;;  %1942 = vmatmul.mubr.msk.f32.vlgmr.msra.gmra.mrb[10].mxu1 %vm886_vm2, %v1218_v17 }
 0x310   : > { %1950 = vmatpush3.msra.mxu1 %v2526_v54  ;;  %1951 = vmatprep.mubr.msk.f32.mxu1 %vm2227_vm1, %v2226_v7  ;;  %1815 = vst [vmem:[%s2634_s15 + $0x10] sm:$0xff] %v1219_v22  ;;  %v2129_v24 = vpop.eup %2128  ;;  %v1513_v54 = vld [vmem:[%s2864_s2 + $0x1a0] sm:$0xff]  ;;  %v1514_v7 = vld [vmem:[%s2864_s2 + $0x1a8] sm:$0xff] }
 0x311   : > { %2035 = vmatprep.subr.bf16.mxu1 %v2034_v19  ;;  %v1379_v27 = vmul.f32 %v2129_v24, %v2546_v25  ;;  %v2040_v25 = vpack.c.bf16 %v1496_v30, %v1495_v29  ;;  %v2042_v32 = vpack.c.bf16 %v1514_v7, %v1513_v54 }
 0x313   : > { %v1380_v31 = vsel %vm886_vm2, %v1379_v27, 0.0  ;;  %1952 = vmatmul.mubr.msk.f32.vlgmr.msra.gmra.mrb[12].mxu1 %vm886_vm2, %v1379_v27 }
 0x314   : > { %2037 = vmatpush3.bf16.msra.mxu1 %v2036_v26  ;;  %1817 = vst [vmem:[%s2634_s15 + $0x18] sm:$0xff] %v1380_v31  ;;  %s2136_s15 = scalar_lea.vmem %s2135_s10, 1024 }
 0x315   : > { %2039 = vmatprep.subr.bf16.mxu1 %v2038_v28  ;;  %p2138_p1 = scmp.lt.s32.totalorder %s2136_s15, %s2130_s29 }
 0x317   : > { %p2139_p2 = por %p2138_p1, %p2137_p0 }
 0x318   : > { %2041 = vmatpush3.bf16.msra.mxu1 %v2040_v25 }
 0x319   : > { %2043 = vmatprep.subr.bf16.mxu1 %v2042_v32  ;;  %p2140_p3 = pnand %p2139_p2, %p2133_p13 }
 0x31c   : > { %2045 = vmatpush3.bf16.msra.mxu1 %v2044_v37 }
 0x31d   : > { %2047 = vmatprep.subr.bf16.mxu1 %v2046_v39 }
 0x320   : > { %2049 = vmatpush3.bf16.msra.mxu1 %v2048_v42 }
 0x321   : > { %2051 = vmatprep.subr.bf16.mxu1 %v2050_v51 }
 0x324   : > { %2053 = vmatpush3.bf16.msra.mxu1 %v2052_v57 }
 0x325   : > { %2055 = vmatprep.subr.bf16.mxu1 %v2054_v62 }
 0x328   : > { %2057 = vmatpush3.bf16.msra.mxu1 %v2056_v4 }
 0x329   : > { %2059 = vmatprep.subr.bf16.mxu1 %v2058_v8 }
 0x32c   : > { %2061 = vmatpush3.bf16.msra.mxu1 %v2060_v11 }
 0x32d   : > { %2063 = vmatprep.subr.bf16.mxu1 %v2062_v38 }
 0x330   : > { %2065 = vmatpush3.bf16.msra.mxu1 %v2064_v15 }
 0x3d7   : > { %v969_v16 = vpop.f32.mrb[6].mxu1 }
 0x3d8   : > { %v1923_v17 = vpop.f32.mrb[7].mxu1 }
 0x3de   : > { %v1130_v19 = vpop.f32.mrb[8].mxu1 }
 0x3df   : > { %v1933_v20 = vpop.f32.mrb[9].mxu1  ;;  %1596 = vmatprep.mubr.f32.mxu0 %v1130_v19 }
 0x3e0   : > { %1597 = vmatmul.mubr.f32.vlgmr.msra.gmra.mrb[14].mxu0 %v969_v16 }
 0x3e2   : > { %v1291_v21 = vpop.f32.mrb[10].mxu1 }
 0x3e3   : > { %v1943_v22 = vpop.f32.mrb[11].mxu1 }
 0x3e6   : > { %v1452_v50 = vpop.f32.mrb[12].mxu1 }
 0x3e7   : > { %v1953_v23 = vpop.f32.mrb[13].mxu1  ;;  %1666 = vmatprep.mubr.f32.mxu1 %v1452_v50 }
 0x3e8   : > { %1667 = vmatmul.mubr.f32.vlgmr.msra.gmra.mrb[14].mxu1 %v1291_v21 }
 0x3e9   : > { %2143 = shalt.err (!%p2140_p3)
}
 0x3ea   : > { %s2144_s11 = scalar_lea.hbm %s2784_s26, 512  ;;  %s2148_s17 = scalar_lea.hbm %s2868_s6, 1024 }
 0x3eb   : > { %p2145_p4 = scmp.ne.s32.totalorder %s2784_s26, %s2144_s11  ;;  %p2149_p9 = scmp.lt.u32.totalorder %s2784_s26, %s2868_s6 }
 0x3ec   : > { %p2150_p10 = scmp.lt.u32.totalorder %s2148_s17, %s2144_s11  ;;  %p2152_p12 = scmp.lt.u32.totalorder %s2144_s11, %s2784_s26 }
 0x3ed   : > { %p2146_p7 = pnand %p2145_p4, %p2305_p5 }
 0x3ee   : > { %p2151_p11 = por %p2150_p10, %p2149_p9 }
 0x3ef   : > { %p2147_p8 = pneg %p2146_p7 }
 0x3f0   : > { %p2153_p13 = por %p2152_p12, %p2151_p11 }
 0x3f2   : > { %p2154_p0 = pnand %p2153_p13, %p2147_p8 }
 0x3f4   : > { %2157 = shalt.err (!%p2154_p0)
}
 0x3f5   : > { %s2229_s12 = smov 128   ;;  %s2230_s29 = smov 8   ;;  %v1819_v28 = vld [vmem:[%s2866_s4] ss:$0 sm:$0xff] }
 0x3f6   : > { %2067 = dma.vmem_to_hbm [thread:$0]  (%p2305_p5), %s2779_s18, 512, %s2784_s26, %s1679_s28, %s2229_s12, %s2229_s12, %s2230_s29  }
 0x3f7   : > { %s1803_s9 = sshll.u32 %s2624_s13, 3  ;;  %s1822_s11 = sshll.u32 %s2288_s25, 7 }
 0x3f8   : > { %s246_s14 = scalar_lea.vmem [#allocation4], %s1803_s9  ;;  %s2818_s26 = scalar_lea.hbm %s2867_s5, %s1822_s11 }
 0x3f9   : > { %s1692_s16 = sshll.u32 %s246_s14, 4  ;;  %s1674_s28 = scalar_lea.sflag [#allocation5], %s2624_s13  ;;  %s2820_s16 = int_to_ptr.vmem [resolvable:$true] %s1692_s16 }
 0x3fa   : > { %s2158_s19 = scalar_lea.vmem %s2820_s16, 128  ;;  %s2231_s25 = smov [#allocation4]  }
 0x3fb   : > { %p2159_p1 = scmp.ne.s32.totalorder %s2820_s16, %s2158_s19  ;;  %s2162_s20 = sshll.u32 %s2231_s25, 4  ;;  %s2163_s20 = int_to_ptr.vmem [resolvable:$false] %s2162_s20 }
 0x3fc   : > { %s2164_s12 = scalar_lea.vmem %s2163_s20, 256  ;;  %p2165_p4 = scmp.lt.s32.totalorder %s2820_s16, %s2163_s20 }
 0x3fd   : > { %p2160_p2 = pnand %p2159_p1, %p2305_p5  ;;  %p2166_p7 = scmp.lt.s32.totalorder %s2164_s12, %s2158_s19 }
 0x3ff   : > { %p2161_p3 = pneg %p2160_p2  ;;  %p2167_p8 = por %p2166_p7, %p2165_p4 }
 0x401   : > { %p2168_p9 = pnand %p2167_p8, %p2161_p3 }
 0x4b3   : > { %v1876_v24 = vpop.f32.mrb[14].mxu0 }
 0x4b4   : > { %v1877_v26 = vpop.f32.mrb[15].mxu0 }
 0x4b5   : > { %v1878_v27 = vadd.f32 %v1877_v26, %v1876_v24 }
 0x4b7   : > { %v1599_v54 = vadd.f32 %v1878_v27, %v1819_v28 }
 0x4bb   : > { %v1911_v29 = vpop.f32.mrb[14].mxu1 }
 0x4bc   : > { %v1912_v30 = vpop.f32.mrb[15].mxu1 }
 0x4bd   : > { %v1913_v7 = vadd.f32 %v1912_v30, %v1911_v29 }
 0x4bf   : > { %v1669_v31 = vadd.f32 %v1913_v7, %v1599_v54 }
 0x4c1   : > { %1672 = vst.msk [vmem:[%s246_s14] sm:$0xff] %vm371_vm0, %v1669_v31 }
 0x4c2   : > { %2171 = shalt.err (!%p2168_p9)
}
 0x4c3   : > { %s2172_s13 = scalar_lea.hbm %s2818_s26, 128  ;;  %s2176_s10 = scalar_lea.hbm %s2867_s5, 256 }
 0x4c4   : > { %p2173_p10 = scmp.ne.s32.totalorder %s2818_s26, %s2172_s13  ;;  %p2177_p13 = scmp.lt.u32.totalorder %s2818_s26, %s2867_s5 }
 0x4c5   : > { %p2178_p0 = scmp.lt.u32.totalorder %s2176_s10, %s2172_s13  ;;  %p2180_p2 = scmp.lt.u32.totalorder %s2172_s13, %s2818_s26 }
 0x4c6   : > { %p2174_p11 = pnand %p2173_p10, %p2305_p5 }
 0x4c7   : > { %p2179_p1 = por %p2178_p0, %p2177_p13 }
 0x4c8   : > { %p2175_p12 = pneg %p2174_p11 }
 0x4c9   : > { %p2181_p3 = por %p2180_p2, %p2179_p1 }
 0x4cb   : > { %p2182_p4 = pnand %p2181_p3, %p2175_p12 }
 0x4cd   : > { %2185 = shalt.err (!%p2182_p4)
}
 0x4ce   : > { %2066 = dma.vmem_to_hbm [thread:$0]  (%p2305_p5), %s2820_s16, 128, %s2818_s26, %s1674_s28  }
 0x4cf PF: > { %p2077_p7 = scmp.ge.s32.totalorder %s2224_s24, 2  ;;  %s1720_s14 = sand.u32 1, %s2212_s21  }
 0x4d0   : > { %s1721_s17 = scalar_lea.sflag [#allocation5], %s1720_s14 }
 0x4d1   : > { %p2071_p8 = pnand %p2077_p7, %p2309_p6 }
 0x4d3   : > { %2203 = dma.done.wait (!%p2071_p8), %s1721_s17, 128  }
 0x4d4   : > { %2205 = vsyncadd (!%p2071_p8), %s1721_s17, 4294967168  ;;  %s1730_s18 = scalar_lea.sflag [#allocation7], %s1720_s14 }
 0x4d5   : > { %2207 = dma.done.wait (!%p2071_p8), %s1730_s18, 512  }
 0x4d6   : > { %2209 = vsyncadd (!%p2071_p8), %s1730_s18, 4294966784  ;;  %p20_p5 = scmp.ge.s32.totalorder %s2292_s27, 4   ;;  %s2871_s21 = smov %s2216_s22 }
 0x4d7   : > { %s2872_s22 = smov %s2220_s23  ;;  %s2873_s23 = smov %s2303_s30 }
 0x4d8   : > { %s2874_s24 = smov %s2292_s27  ;;  %22 = sbr.rel (!%p20_p5) target bundleno = 5 (0x5), region = 95 }
 0x4df   :  { %1735 = vsyncpa [#allocation5], 1 }
 0x4e0   :  { %1737 = vsyncpa [#allocation5 + $0x1], 1 }
 0x4e1   :  { %1738 = vsyncpa [#allocation7], 1 }
 0x4e2   :  { %1740 = vsyncpa [#allocation7 + $0x1], 1 }

// kernel: tpu_custom_call.1
= control target key start
LH: loop header
LB: loop body
LE: loop exit
PB: predicated region body
PF: predicated region fallthrough
CT: control target
= control target key end

     0   :  { %12 = vsyncpa [#allocation5], 0  ;;  %s2862_s0 = inlined_call_operand.vmem [shape: f32[2,8,32], index: 0, kind: input, shape index: {}]   ;;  %s2863_s1 = inlined_call_operand.vmem [shape: f32[32,1536], index: 1, kind: input, shape index: {}]   ;;  %s2864_s2 = inlined_call_operand.vmem [shape: f32[512,32], index: 2, kind: input, shape index: {}]   ;;  %s2865_s3 = inlined_call_operand.vmem [shape: f32[1,1536], index: 3, kind: input, shape index: {}]   ;;  %s2866_s4 = inlined_call_operand.vmem [shape: f32[1,32], index: 4, kind: input, shape index: {}]   ;;  %s2867_s5 = inlined_call_operand.hbm [shape: f32[2,8,32], index: 5, kind: output, shape index: {0}]   ;;  %s2868_s6 = inlined_call_operand.hbm [shape: f32[2,4,8,128], index: 6, kind: output, shape index: {1}]  }
   0x1   :  { %14 = vsyncpa [#allocation5 + $0x1], 0 }
   0x2   :  { %15 = vsyncpa [#allocation7], 0 }
   0x3   :  { %17 = vsyncpa [#allocation7 + $0x1], 0  ;;  %s2267_s21 = smov 0   ;;  %s2269_s22 = smov 0  }
   0x4   :  { %s2271_s23 = smov 0   ;;  %s2273_s24 = smov 0  }
   0x5 LB: > { %s2288_s25 = sadd.s32 4294967295, %s2224_s24   ;;  %s1799_s26 = sadd.s32 4294967294, %s2224_s24   ;;  %s2224_s24 = sphi %s2273_s24, %s2874_s24   ;;  %s2220_s23 = sphi %s2271_s23, %s2873_s23   ;;  %s2216_s22 = sphi %s2269_s22, %s2872_s22   ;;  %s2212_s21 = sphi %s2267_s21, %s2871_s21  }
   0x6   : > { %s2292_s27 = sadd.s32 1, %s2224_s24   ;;  %s140_s28 = sadd.s32 1, %s2220_s23 }
   0x7   : > { %s137_s29 = ssub.s32 %s2224_s24, %s2292_s27  ;;  %p150_p0 = scmp.ne.s32.totalorder %s2220_s23, %s2216_s22 }
   0x8   : > { %p138_p1 = scmp.eq.s32.totalorder %s137_s29, 0  ;;  %p151_p2 = scmp.eq.s32.totalorder %s2288_s25, 1 }
   0x9   : > { %p156_p3 = scmp.ne.s32.totalorder %s2216_s22, %s2212_s21  ;;  %p157_p4 = scmp.eq.s32.totalorder %s1799_s26, 1 }
   0xa   : > { %s2303_s30 = scalar_select %p138_p1, %s2220_s23, %s140_s28  }
   0xb   : > { %p2305_p5 = por %p151_p2, %p150_p0  ;;  %p2309_p6 = por %p157_p4, %p156_p3 }
   0xc   : > { %p1802_p7 = scmp.ge.s32.totalorder %s2224_s24, 1  ;;  %p220_p8 = scmp.lt.s32.totalorder %s2224_s24, 3 }
   0xe   : > { %p221_p9 = pnand %p1802_p7, %p220_p8 }
   0xf   : > { %v260_v0 = vld [vmem:[%s2863_s1 + $0x8] sm:$0xff] (!%p221_p9)  ;;  %v262_v2 = vld [vmem:[%s2863_s1 + $0x18] sm:$0xff] (!%p221_p9)  ;;  %p254_p10 = scmp.lt.s32.totalorder (!%p221_p9), %s2288_s25, 1  ;;  %v259_v5 = vld [vmem:[%s2863_s1] sm:$0xff] (!%p221_p9)  ;;  %v2226_v7 = vmov (!%p221_p9), 0.0   ;;  %vm371_vm0 = vcmask (!%p221_p9), 261120  }
  0x10   : > { %224 = sbr.rel (%p221_p9) target bundleno = 1231 (0x4cf), region = 40  ;;  %v272_v1 = vld [vmem:[%s2863_s1 + $0x68] sm:$0xff] (!%p221_p9)  ;;  %v274_v4 = vld [vmem:[%s2863_s1 + $0x78] sm:$0xff] (!%p221_p9)  ;;  %v271_v6 = vld [vmem:[%s2863_s1 + $0x60] sm:$0xff] (!%p221_p9)  ;;  %439 = vmatprep.mubr.f32.mxu0 (!%p221_p9), %v2226_v7  ;;  %510 = vmatprep.mubr.f32.mxu1 (!%p221_p9), %v2226_v7  ;;  %vm2227_vm1 = vmmov (!%p221_p9), 0   ;;  %vm886_vm2 = vcmask (!%p221_p9), 64512  }
  0x11   : > { %v1954_v3 = vpack.c.bf16 (!%p221_p9), %v272_v1, %v260_v0  ;;  %v1962_v8 = vpack.c.bf16 (!%p221_p9), %v274_v4, %v262_v2  ;;  %v1956_v9 = vpack.c.bf16 (!%p221_p9), %v271_v6, %v259_v5  ;;  %v261_v10 = vld [vmem:[%s2863_s1 + $0x10] sm:$0xff] (!%p221_p9)  ;;  %v284_v12 = vld [vmem:[%s2863_s1 + $0xc8] sm:$0xff] (!%p221_p9)  ;;  %v286_v15 = vld [vmem:[%s2863_s1 + $0xd8] sm:$0xff] (!%p221_p9)  ;;  %s2624_s13 = sand.u32 (!%p221_p9), 1, %s2216_s22   ;;  %s1827_s19 = sshll.u32 (!%p221_p9), %s2288_s25, 9 }
  0x12   : > { %v273_v11 = vld [vmem:[%s2863_s1 + $0x70] sm:$0xff] (!%p221_p9)  ;;  %v296_v14 = vld [vmem:[%s2863_s1 + $0x128] sm:$0xff] (!%p221_p9)  ;;  %v298_v16 = vld [vmem:[%s2863_s1 + $0x138] sm:$0xff] (!%p221_p9)  ;;  %s1804_s14 = sshll.u32 (!%p221_p9), %s2624_s13, 5  ;;  %s2784_s26 = scalar_lea.hbm (!%p221_p9), %s2868_s6, %s1827_s19 }
  0x13   : > { %1955 = vmatprep.subr.bf16.mxu0 (!%p221_p9), %v1954_v3  ;;  %v1964_v13 = vpack.c.bf16 (!%p221_p9), %v273_v11, %v261_v10  ;;  %1963 = vmatprep.subr.bf16.mxu1 (!%p221_p9), %v1962_v8  ;;  %v1958_v17 = vpack.c.bf16 (!%p221_p9), %v296_v14, %v284_v12  ;;  %v1966_v18 = vpack.c.bf16 (!%p221_p9), %v298_v16, %v286_v15  ;;  %v283_v19 = vld [vmem:[%s2863_s1 + $0xc0] sm:$0xff] (!%p221_p9)  ;;  %v285_v21 = vld [vmem:[%s2863_s1 + $0xd0] sm:$0xff] (!%p221_p9)  ;;  %v264_v24 = vld [vmem:[%s2863_s1 + $0x28] sm:$0xff] (!%p221_p9)  ;;  %v311_v11 = vlaneseq (!%p221_p9)  ;;  %s2634_s15 = scalar_lea.vmem (!%p221_p9), [#allocation6], %s1804_s14  ;;  %s1679_s28 = scalar_lea.sflag (!%p221_p9), [#allocation7], %s2624_s13 }
  0x14   : > { %1957 = vmatpush1.bf16.msra.mxu0 (!%p221_p9), %v1956_v9  ;;  %v295_v20 = vld [vmem:[%s2863_s1 + $0x120] sm:$0xff] (!%p221_p9)  ;;  %v297_v23 = vld [vmem:[%s2863_s1 + $0x130] sm:$0xff] (!%p221_p9)  ;;  %v276_v25 = vld [vmem:[%s2863_s1 + $0x88] sm:$0xff] (!%p221_p9)  ;;  %s1705_s18 = sshll.u32 (!%p221_p9), %s2634_s15, 4  ;;  %s2228_s9 = smov (!%p221_p9), [#allocation6]   ;;  %s2779_s18 = int_to_ptr.vmem [resolvable:$true] %s1705_s18 }
  0x15   : > { %1965 = vmatpush1.bf16.msra.mxu1 (!%p221_p9), %v1964_v13  ;;  %v1960_v22 = vpack.c.bf16 (!%p221_p9), %v295_v20, %v283_v19  ;;  %1959 = vmatprep.subr.bf16.mxu0 (!%p221_p9), %v1958_v17  ;;  %v1968_v26 = vpack.c.bf16 (!%p221_p9), %v297_v23, %v285_v21  ;;  %v1970_v28 = vpack.c.bf16 (!%p221_p9), %v276_v25, %v264_v24  ;;  %v266_v29 = vld [vmem:[%s2863_s1 + $0x38] sm:$0xff] (!%p221_p9)  ;;  %v263_v32 = vld [vmem:[%s2863_s1 + $0x20] sm:$0xff] (!%p221_p9)  ;;  %v265_v34 = vld [vmem:[%s2863_s1 + $0x30] sm:$0xff] (!%p221_p9)  ;;  %v2490_v12 = vshrl.u32 (!%p221_p9), %v311_v11, 7  ;;  %s2130_s29 = scalar_lea.vmem (!%p221_p9), %s2779_s18, 512 }
  0x16   : > { %1967 = vmatprep.subr.bf16.mxu1 (!%p221_p9), %v1966_v18  ;;  %v278_v30 = vld [vmem:[%s2863_s1 + $0x98] sm:$0xff] (!%p221_p9)  ;;  %v275_v33 = vld [vmem:[%s2863_s1 + $0x80] sm:$0xff] (!%p221_p9)  ;;  %v277_v36 = vld [vmem:[%s2863_s1 + $0x90] sm:$0xff] (!%p221_p9)  ;;  %p2131_p11 = scmp.ne.s32.totalorder (!%p221_p9), %s2779_s18, %s2130_s29 }
  0x17   : > { %s255_s12 = scalar_select %p254_p10, %s2288_s25, 1  ;;  %v1978_v31 = vpack.c.bf16 %v278_v30, %v266_v29  ;;  %v1972_v35 = vpack.c.bf16 %v275_v33, %v263_v32  ;;  %v288_v37 = vld [vmem:[%s2863_s1 + $0xe8] sm:$0xff]  ;;  %v1980_v39 = vpack.c.bf16 %v277_v36, %v265_v34  ;;  %v290_v41 = vld [vmem:[%s2863_s1 + $0xf8] sm:$0xff]  ;;  %v287_v43 = vld [vmem:[%s2863_s1 + $0xe0] sm:$0xff]  ;;  %v325_v13 = vsub.s32 3, %v2490_v12 }
  0x18   : > { %1961 = vmatpush1.bf16.msra.mxu0 %v1960_v22  ;;  %v300_v38 = vld [vmem:[%s2863_s1 + $0x148] sm:$0xff]  ;;  %v302_v42 = vld [vmem:[%s2863_s1 + $0x158] sm:$0xff]  ;;  %v299_v45 = vld [vmem:[%s2863_s1 + $0x140] sm:$0xff]  ;;  %v321_v16 = vsub.s32 2, %v2490_v12  ;;  %v317_v17 = vsub.s32 1, %v2490_v12  ;;  %v313_v19 = vsub.s32 0, %v2490_v12  ;;  %p2132_p12 = pnand %p2131_p11, %p2305_p5 }
  0x19   : > { %s1805_s10 = sshll.u32 %s255_s12, 3  ;;  %1969 = vmatpush1.bf16.msra.mxu1 %v1968_v26  ;;  %1971 = vmatprep.subr.bf16.mxu0 %v1970_v28  ;;  %v1974_v40 = vpack.c.bf16 %v300_v38, %v288_v37  ;;  %v1982_v44 = vpack.c.bf16 %v302_v42, %v290_v41  ;;  %v289_v46 = vld [vmem:[%s2863_s1 + $0xf0] sm:$0xff]  ;;  %v270_v48 = vld [vmem:[%s2863_s1 + $0x58] sm:$0xff]  ;;  %v1976_v50 = vpack.c.bf16 %v299_v45, %v287_v43  ;;  %v268_v51 = vld [vmem:[%s2863_s1 + $0x48] sm:$0xff]  ;;  %v329_v26 = vsub.s32 4, %v2490_v12 }
  0x1a   : > { %s257_s16 = scalar_lea.vmem %s2862_s0, %s1805_s10  ;;  %1979 = vmatprep.subr.bf16.mxu1 %v1978_v31  ;;  %v301_v47 = vld [vmem:[%s2863_s1 + $0x150] sm:$0xff]  ;;  %v282_v49 = vld [vmem:[%s2863_s1 + $0xb8] sm:$0xff]  ;;  %v280_v52 = vld [vmem:[%s2863_s1 + $0xa8] sm:$0xff]  ;;  %v341_v32 = vsub.s32 7, %v2490_v12  ;;  %p2133_p13 = pneg %p2132_p12 }
  0x1b   : > { %v2376_v27 = vld [vmem:[%s257_s16] sm:$0xff]  ;;  %v1984_v53 = vpack.c.bf16 %v301_v47, %v289_v46  ;;  %v1986_v54 = vpack.c.bf16 %v280_v52, %v268_v51  ;;  %v1994_v57 = vpack.c.bf16 %v282_v49, %v270_v48  ;;  %v269_v58 = vld [vmem:[%s2863_s1 + $0x50] sm:$0xff]  ;;  %v294_v60 = vld [vmem:[%s2863_s1 + $0x118] sm:$0xff]  ;;  %s2134_s10 = sshll.u32 %s2228_s9, 4  ;;  %s2135_s10 = int_to_ptr.vmem [resolvable:$false] %s2134_s10 }
  0x1c   : > { %1806 = vmatmul.mubr.msk.f32.vlgmr.msra.gmra.mrb[0].mxu0 %vm371_vm0, %v2376_v27  ;;  %1807 = vmatmul.mubr.msk.f32.vlgmr.msra.gmra.mrb[0].mxu1 %vm371_vm0, %v2376_v27  ;;  %v267_v55 = vld [vmem:[%s2863_s1 + $0x40] sm:$0xff]  ;;  %v281_v59 = vld [vmem:[%s2863_s1 + $0xb0] sm:$0xff]  ;;  %v306_v61 = vld [vmem:[%s2863_s1 + $0x178] sm:$0xff]  ;;  %p2137_p0 = scmp.lt.s32.totalorder %s2779_s18, %s2135_s10 }
  0x1d   : > { %1973 = vmatpush1.bf16.msra.mxu0 %v1972_v35  ;;  %1981 = vmatpush1.bf16.msra.mxu1 %v1980_v39  ;;  %v279_v56 = vld [vmem:[%s2863_s1 + $0xa0] sm:$0xff]  ;;  %v292_v62 = vld [vmem:[%s2863_s1 + $0x108] sm:$0xff]  ;;  %v1996_v1 = vpack.c.bf16 %v281_v59, %v269_v58  ;;  %v1998_v5 = vpack.c.bf16 %v306_v61, %v294_v60  ;;  %v293_v6 = vld [vmem:[%s2863_s1 + $0x110] sm:$0xff]  ;;  %v337_v35 = vsub.s32 6, %v2490_v12 }
  0x1e   : > { %1975 = vmatprep.subr.bf16.mxu0 %v1974_v40  ;;  %1983 = vmatprep.subr.bf16.mxu1 %v1982_v44  ;;  %v304_v63 = vld [vmem:[%s2863_s1 + $0x168] sm:$0xff]  ;;  %v1988_v0 = vpack.c.bf16 %v279_v56, %v267_v55  ;;  %v291_v3 = vld [vmem:[%s2863_s1 + $0x100] sm:$0xff]  ;;  %v305_v8 = vld [vmem:[%s2863_s1 + $0x170] sm:$0xff] }
  0x1f   : > { %581 = vmatprep.mubr.f32.mxu0 %v2226_v7  ;;  %652 = vmatprep.mubr.f32.mxu1 %v2226_v7  ;;  %v1990_v2 = vpack.c.bf16 %v304_v63, %v292_v62  ;;  %v303_v4 = vld [vmem:[%s2863_s1 + $0x160] sm:$0xff]  ;;  %v2000_v10 = vpack.c.bf16 %v305_v8, %v293_v6  ;;  %v308_v14 = vld [vmem:[%s2865_s3 + $0x8] sm:$0xf] }
  0x20   : > { %v1992_v9 = vpack.c.bf16 %v303_v4, %v291_v3  ;;  %v358_v15 = vrot.slane %v308_v14, %v325_v13  ;;  %v2501_v18 = vld [vmem:[%s2865_s3] sm:$0xff]  ;;  %v346_v44 = vrot.slane %v308_v14, %v313_v19  ;;  %v354_v45 = vrot.slane %v308_v14, %v321_v16 }
  0x21   : > { %1977 = vmatpush1.bf16.msra.mxu0 %v1976_v50  ;;  %1985 = vmatpush1.bf16.msra.mxu1 %v1984_v53  ;;  %v322_v20 = vrot.slane %v2501_v18, %v321_v16  ;;  %v318_v21 = vrot.slane %v2501_v18, %v317_v17  ;;  %v314_v23 = vrot.slane %v2501_v18, %v313_v19 }
  0x22   : > { %1987 = vmatprep.subr.bf16.mxu0 %v1986_v54  ;;  %1995 = vmatprep.subr.bf16.mxu1 %v1994_v57  ;;  %v330_v31 = vrot.slane %v2501_v18, %v329_v26  ;;  %v326_v33 = vrot.slane %v2501_v18, %v325_v13  ;;  %v342_v39 = vrot.slane %v2501_v18, %v341_v32  ;;  %v1479_v32 = vld [vmem:[%s2864_s2 + $0x90] sm:$0xff] }
  0x23   : > { %v338_v42 = vrot.slane %v2501_v18, %v337_v35  ;;  %v350_v46 = vrot.slane %v308_v14, %v317_v17 }
  0x24   : > { %1808 = vmatmul.mubr.msk.f32.vlgmr.msra.gmra.mrb[2].mxu0 %vm371_vm0, %v2376_v27  ;;  %1809 = vmatmul.mubr.msk.f32.vlgmr.msra.gmra.mrb[2].mxu1 %vm371_vm0, %v2376_v27 }
  0x25   : > { %1989 = vmatpush1.bf16.msra.mxu0 %v1988_v0  ;;  %1997 = vmatpush1.bf16.msra.mxu1 %v1996_v1 }
  0x26   : > { %1991 = vmatprep.subr.bf16.mxu0 %v1990_v2  ;;  %1999 = vmatprep.subr.bf16.mxu1 %v1998_v5 }
  0x27   : > { %794 = vmatprep.mubr.f32.mxu1 %v2226_v7  ;;  %723 = vmatprep.mubr.f32.mxu0 %v2226_v7 }
  0x29   : > { %1993 = vmatpush1.bf16.msra.mxu0 %v1992_v9  ;;  %2001 = vmatpush1.bf16.msra.mxu1 %v2000_v10 }
  0x2a   : > { %1914 = vmatprep.subr.mxu0 %v2226_v7  ;;  %1919 = vmatprep.subr.mxu1 %v2226_v7 }
  0x2c   : > { %1810 = vmatmul.mubr.msk.f32.vlgmr.msra.gmra.mrb[4].mxu0 %vm371_vm0, %v2376_v27  ;;  %1811 = vmatmul.mubr.msk.f32.vlgmr.msra.gmra.mrb[4].mxu1 %vm371_vm0, %v2376_v27 }
  0x2d   : > { %1916 = vmatprep.mubr.msk.f32.mxu0 %vm2227_vm1, %v2226_v7  ;;  %1921 = vmatprep.mubr.msk.f32.mxu1 %vm2227_vm1, %v2226_v7 }
  0xef   : > { %v441_v22 = vpop.f32.mrb[0].mxu0  ;;  %v512_v24 = vpop.f32.mrb[0].mxu1 }
  0xf0   : > { %v443_v25 = vpop.f32.mrb[1].mxu0  ;;  %v513_v27 = vadd.f32 %v512_v24, %v322_v20  ;;  %v514_v29 = vpop.f32.mrb[1].mxu1  ;;  %v442_v30 = vadd.f32 %v441_v22, %v314_v23 }
  0xf1   : > { %v444_v28 = vadd.f32 %v443_v25, %v318_v21  ;;  %v515_v41 = vadd.f32 %v514_v29, %v326_v33  ;;  %v1461_v29 = vld [vmem:[%s2864_s2] sm:$0xff]  ;;  %v1480_v33 = vld [vmem:[%s2864_s2 + $0x98] sm:$0xff] }
  0xf2   : > { %1920 = vmatpush3.msra.mxu1 %v513_v27  ;;  %v1477_v27 = vld [vmem:[%s2864_s2 + $0x80] sm:$0xff]  ;;  %v2006_v35 = vpack.c.bf16 %v1480_v33, %v1479_v32 }
  0xf3   : > { %1915 = vmatpush3.xpose.msra.mxu0 %v444_v28  ;;  %1929 = vmatprep.subr.mxu1 %v2226_v7  ;;  %v1478_v28 = vld [vmem:[%s2864_s2 + $0x88] sm:$0xff]  ;;  %v1497_v33 = vld [vmem:[%s2864_s2 + $0x120] sm:$0xff] }
  0xf4   : > { %1924 = vmatprep.subr.mxu0 %v2226_v7 }
  0xf6   : > { %1917 = vmatmul.mubr.f32.vlgmr.msra.gmra.mrb[6].mxu0 %v442_v30  ;;  %v2002_v30 = vpack.c.bf16 %v1478_v28, %v1477_v27 }
  0xf7   : > { %v583_v34 = vpop.f32.mrb[2].mxu0  ;;  %1926 = vmatprep.mubr.msk.f32.mxu0 %vm2227_vm1, %v2226_v7  ;;  %v654_v37 = vpop.f32.mrb[2].mxu1 }
  0xf8   : > { %v584_v36 = vadd.f32 %v583_v34, %v330_v31  ;;  %v2516_v38 = vpop.f32.mrb[3].mxu0  ;;  %v656_v40 = vpop.f32.mrb[3].mxu1  ;;  %v655_v47 = vadd.f32 %v654_v37, %v338_v42  ;;  %v1462_v31 = vld [vmem:[%s2864_s2 + $0x8] sm:$0xff]  ;;  %v1464_v37 = vld [vmem:[%s2864_s2 + $0x18] sm:$0xff] }
  0xf9   : > { %v657_v43 = vadd.f32 %v656_v40, %v342_v39  ;;  %v2004_v34 = vpack.c.bf16 %v1462_v31, %v1461_v29  ;;  %v1481_v39 = vld [vmem:[%s2864_s2 + $0xa0] sm:$0xff]  ;;  %v1482_v40 = vld [vmem:[%s2864_s2 + $0xa8] sm:$0xff]  ;;  %v1495_v29 = vld [vmem:[%s2864_s2 + $0x110] sm:$0xff] }
  0xfa   : > { %1925 = vmatpush3.xpose.msra.mxu0 %v584_v36  ;;  %v1463_v36 = vld [vmem:[%s2864_s2 + $0x10] sm:$0xff]  ;;  %v2010_v42 = vpack.c.bf16 %v1482_v40, %v1481_v39 }
  0xfb   : > { %1934 = vmatprep.subr.mxu0 %v2226_v7  ;;  %v1499_v40 = vld [vmem:[%s2864_s2 + $0x130] sm:$0xff] }
  0xfd   : > { %1927 = vmatmul.mubr.f32.vlgmr.msra.gmra.mrb[8].mxu0 %v515_v41  ;;  %v2008_v41 = vpack.c.bf16 %v1464_v37, %v1463_v36  ;;  %v1516_v36 = vld [vmem:[%s2864_s2 + $0x1b8] sm:$0xff] }
  0xfe   : > { %1935 = vmatpush3.xpose.msra.mxu0 %v657_v43  ;;  %1936 = vmatprep.mubr.msk.f32.mxu0 %vm2227_vm1, %v2226_v7  ;;  %v1465_v43 = vld [vmem:[%s2864_s2 + $0x20] sm:$0xff] }
  0xff   : > { %v725_v48 = vpop.f32.mrb[4].mxu0  ;;  %1944 = vmatprep.subr.mxu0 %v2226_v7  ;;  %v796_v49 = vpop.f32.mrb[4].mxu1 }
 0x100   : > { %v2524_v50 = vadd.f32 %v725_v48, %v346_v44  ;;  %v727_v51 = vpop.f32.mrb[5].mxu0  ;;  %v797_v52 = vadd.f32 %v796_v49, %v354_v45  ;;  %v798_v53 = vpop.f32.mrb[5].mxu1  ;;  %v1466_v44 = vld [vmem:[%s2864_s2 + $0x28] sm:$0xff]  ;;  %v1483_v45 = vld [vmem:[%s2864_s2 + $0xb0] sm:$0xff] }
 0x101   : > { %1937 = vmatmul.mubr.f32.vlgmr.msra.gmra.mrb[10].mxu0 %v655_v47  ;;  %v2526_v54 = vadd.f32 %v798_v53, %v358_v15  ;;  %v728_v55 = vadd.f32 %v727_v51, %v350_v46  ;;  %v1484_v46 = vld [vmem:[%s2864_s2 + $0xb8] sm:$0xff]  ;;  %v2012_v47 = vpack.c.bf16 %v1466_v44, %v1465_v43  ;;  %v1467_v49 = vld [vmem:[%s2864_s2 + $0x30] sm:$0xff]  ;;  %v1486_v53 = vld [vmem:[%s2864_s2 + $0xc8] sm:$0xff] }
 0x102   : > { %1946 = vmatprep.mubr.msk.f32.mxu0 %vm2227_vm1, %v2226_v7  ;;  %1945 = vmatpush3.xpose.msra.mxu0 %v797_v52  ;;  %v2014_v48 = vpack.c.bf16 %v1484_v46, %v1483_v45  ;;  %v1468_v51 = vld [vmem:[%s2864_s2 + $0x38] sm:$0xff]  ;;  %v1485_v52 = vld [vmem:[%s2864_s2 + $0xc0] sm:$0xff]  ;;  %v1490_v44 = vld [vmem:[%s2864_s2 + $0xe8] sm:$0xff] }
 0x103   : > { %2003 = vmatprep.subr.bf16.mxu0 %v2002_v30  ;;  %v1496_v30 = vld [vmem:[%s2864_s2 + $0x118] sm:$0xff]  ;;  %v1489_v43 = vld [vmem:[%s2864_s2 + $0xe0] sm:$0xff] }
 0x104   : > { %v1517_v45 = vld [vmem:[%s2864_s2 + $0x1c0] sm:$0xff]  ;;  %v2026_v46 = vpack.c.bf16 %v1490_v44, %v1489_v43 }
 0x105   : > { %1947 = vmatmul.mubr.f32.vlgmr.msra.gmra.mrb[12].mxu0 %v728_v55  ;;  %v2016_v55 = vpack.c.bf16 %v1468_v51, %v1467_v49  ;;  %v1474_v49 = vld [vmem:[%s2864_s2 + $0x68] sm:$0xff] }
 0x106   : > { %2005 = vmatpush3.bf16.msra.mxu0 %v2004_v34  ;;  %v1498_v34 = vld [vmem:[%s2864_s2 + $0x128] sm:$0xff] }
 0x107   : > { %2007 = vmatprep.subr.bf16.mxu0 %v2006_v35  ;;  %v1515_v35 = vld [vmem:[%s2864_s2 + $0x1b0] sm:$0xff]  ;;  %v2044_v37 = vpack.c.bf16 %v1498_v34, %v1497_v33 }
 0x108   : > { %v2046_v39 = vpack.c.bf16 %v1516_v36, %v1515_v35 }
 0x10a   : > { %2009 = vmatpush3.bf16.msra.mxu0 %v2008_v41  ;;  %v1500_v41 = vld [vmem:[%s2864_s2 + $0x138] sm:$0xff] }
 0x10b   : > { %2011 = vmatprep.subr.bf16.mxu0 %v2010_v42  ;;  %v2048_v42 = vpack.c.bf16 %v1500_v41, %v1499_v40 }
 0x10e   : > { %2013 = vmatpush3.bf16.msra.mxu0 %v2012_v47  ;;  %v1518_v47 = vld [vmem:[%s2864_s2 + $0x1c8] sm:$0xff] }
 0x10f   : > { %2015 = vmatprep.subr.bf16.mxu0 %v2014_v48  ;;  %v1473_v48 = vld [vmem:[%s2864_s2 + $0x60] sm:$0xff]  ;;  %v2050_v51 = vpack.c.bf16 %v1518_v47, %v1517_v45 }
 0x112   : > { %2017 = vmatpush3.bf16.msra.mxu0 %v2016_v55  ;;  %v1502_v55 = vld [vmem:[%s2864_s2 + $0x148] sm:$0xff] }
 0x1c9   : > { %v882_v56 = vpop.f32.mrb[6].mxu0 }
 0x1ca   : > { %v1918_v57 = vpop.f32.mrb[7].mxu0  ;;  %v887_v58 = vsel %vm886_vm2, %v882_v56, -inf }
 0x1cb   : > { %888 = vmax.xlane.f32.xlu0 %v887_v58  ;;  %v1469_v57 = vld [vmem:[%s2864_s2 + $0x40] sm:$0xff]  ;;  %v1470_v58 = vld [vmem:[%s2864_s2 + $0x48] sm:$0xff] }
 0x1d0   : > { %v1043_v59 = vpop.f32.mrb[8].mxu0 }
 0x1d1   : > { %v1928_v60 = vpop.f32.mrb[9].mxu0  ;;  %v1047_v61 = vsel %vm886_vm2, %v1043_v59, -inf }
 0x1d2   : > { %1048 = vmax.xlane.f32.xlu0 %v1047_v61  ;;  %v1488_v60 = vld [vmem:[%s2864_s2 + $0xd8] sm:$0xff]  ;;  %v2020_v61 = vpack.c.bf16 %v1470_v58, %v1469_v57 }
 0x1d3   : > { %v1492_v58 = vld [vmem:[%s2864_s2 + $0xf8] sm:$0xff] }
 0x1d4   : > { %v1204_v62 = vpop.f32.mrb[10].mxu0 }
 0x1d5   : > { %v1938_v63 = vpop.f32.mrb[11].mxu0  ;;  %v1208_v0 = vsel %vm886_vm2, %v1204_v62, -inf }
 0x1d6   : > { %1209 = vmax.xlane.f32.xlu1 %v1208_v0  ;;  %v1471_v63 = vld [vmem:[%s2864_s2 + $0x50] sm:$0xff]  ;;  %v1472_v0 = vld [vmem:[%s2864_s2 + $0x58] sm:$0xff] }
 0x1d8   : > { %v1365_v1 = vpop.f32.mrb[12].mxu0 }
 0x1d9   : > { %v1948_v2 = vpop.f32.mrb[13].mxu0  ;;  %v1369_v3 = vsel %vm886_vm2, %v1365_v1, -inf }
 0x1da   : > { %1370 = vmax.xlane.f32.xlu1 %v1369_v3  ;;  %v333_v3 = vsub.s32 5, %v2490_v12 }
 0x258   : > { %v889_v4 = vpop.xlane.xlu0 %888 }
 0x259   : > { %v890_v5 = vsub.f32 %v882_v56, %v889_v4  ;;  %v2018_v56 = vpack.c.bf16 %v1486_v53, %v1485_v52  ;;  %v2028_v52 = vpack.c.bf16 %v1474_v49, %v1473_v48  ;;  %v1501_v53 = vld [vmem:[%s2864_s2 + $0x140] sm:$0xff] }
 0x25a   : > { %v2052_v57 = vpack.c.bf16 %v1502_v55, %v1501_v53 }
 0x25b   : > { %v891_v6 = vmul.f32 1.442695, %v890_v5  ;;  %2019 = vmatprep.subr.bf16.mxu0 %v2018_v56  ;;  %v334_v5 = vrot.slane %v2501_v18, %v333_v3  ;;  %v1491_v56 = vld [vmem:[%s2864_s2 + $0xf0] sm:$0xff]  ;;  %v1504_v3 = vld [vmem:[%s2864_s2 + $0x158] sm:$0xff] }
 0x25c   : > { %2021 = vmatpush3.bf16.msra.mxu0 %v2020_v61  ;;  %v2030_v61 = vpack.c.bf16 %v1492_v58, %v1491_v56 }
 0x25d   : > { %2114 = vpow2.f32 %v891_v6 }
 0x25f   : > { %v1049_v8 = vpop.xlane.xlu0 %1048 }
 0x260   : > { %v1050_v9 = vsub.f32 %v1043_v59, %v1049_v8  ;;  %v1487_v59 = vld [vmem:[%s2864_s2 + $0xd0] sm:$0xff] }
 0x262   : > { %v1051_v10 = vmul.f32 1.442695, %v1050_v9 }
 0x263   : > { %v1210_v11 = vpop.xlane.xlu1 %1209 }
 0x264   : > { %2116 = vpow2.f32 %v1051_v10  ;;  %v1211_v13 = vsub.f32 %v1204_v62, %v1210_v11  ;;  %v2022_v62 = vpack.c.bf16 %v1488_v60, %v1487_v59  ;;  %v586_v10 = vadd.f32 %v2516_v38, %v334_v5  ;;  %v1519_v59 = vld [vmem:[%s2864_s2 + $0x1d0] sm:$0xff]  ;;  %v1520_v60 = vld [vmem:[%s2864_s2 + $0x1d8] sm:$0xff]  ;;  %v1521_v5 = vld [vmem:[%s2864_s2 + $0x1e0] sm:$0xff] }
 0x266   : > { %v1212_v14 = vmul.f32 1.442695, %v1211_v13  ;;  %2023 = vmatprep.subr.bf16.mxu0 %v2022_v62  ;;  %v1509_v13 = vld [vmem:[%s2864_s2 + $0x180] sm:$0xff]  ;;  %v2054_v62 = vpack.c.bf16 %v1520_v60, %v1519_v59 }
 0x267   : > { %v2534_v15 = vpop.eup %2114  ;;  %v1371_v16 = vpop.xlane.xlu1 %1370 }
 0x268   : > { %2118 = vpow2.f32 %v1212_v14  ;;  %v893_v17 = vsel %vm886_vm2, %v2534_v15, 0.0  ;;  %v1372_v19 = vsub.f32 %v1365_v1, %v1371_v16  ;;  %v2024_v1 = vpack.c.bf16 %v1472_v0, %v1471_v63  ;;  %v1510_v14 = vld [vmem:[%s2864_s2 + $0x188] sm:$0xff]  ;;  %v1475_v63 = vld [vmem:[%s2864_s2 + $0x70] sm:$0xff]  ;;  %v1476_v0 = vld [vmem:[%s2864_s2 + $0x78] sm:$0xff] }
 0x269   : > { %894 = vadd.xlane.f32.xlu0 %v893_v17 }
 0x26a   : > { %v1373_v20 = vmul.f32 1.442695, %v1372_v19  ;;  %2025 = vmatpush3.bf16.msra.mxu0 %v2024_v1  ;;  %v2034_v19 = vpack.c.bf16 %v1510_v14, %v1509_v13  ;;  %v1503_v1 = vld [vmem:[%s2864_s2 + $0x150] sm:$0xff]  ;;  %v1508_v14 = vld [vmem:[%s2864_s2 + $0x178] sm:$0xff] }
 0x26b   : > { %2027 = vmatprep.subr.bf16.mxu0 %v2026_v46  ;;  %v1507_v13 = vld [vmem:[%s2864_s2 + $0x170] sm:$0xff] }
 0x26c   : > { %2120 = vpow2.f32 %v1373_v20  ;;  %v1493_v20 = vld [vmem:[%s2864_s2 + $0x100] sm:$0xff] }
 0x26e   : > { %v2538_v21 = vpop.eup %2116  ;;  %2029 = vmatpush3.bf16.msra.mxu0 %v2028_v52 }
 0x26f   : > { %v1053_v22 = vsel %vm886_vm2, %v2538_v21, 0.0  ;;  %2031 = vmatprep.subr.bf16.mxu0 %v2030_v61 }
 0x270   : > { %1054 = vadd.xlane.f32.xlu1 %v1053_v22 }
 0x272   : > { %v2542_v23 = vpop.eup %2118 }
 0x273   : > { %v1214_v24 = vsel %vm886_vm2, %v2542_v23, 0.0 }
 0x274   : > { %1215 = vadd.xlane.f32.xlu0 %v1214_v24 }
 0x276   : > { %v2546_v25 = vpop.eup %2120 }
 0x277   : > { %v1375_v26 = vsel %vm886_vm2, %v2546_v25, 0.0 }
 0x278   : > { %1376 = vadd.xlane.f32.xlu1 %v1375_v26 }
 0x2f6   : > { %v895_v2 = vpop.xlane.xlu0 %894 }
 0x2f7   : > { %2122 = vrcp.f32 %v895_v2  ;;  %v2032_v2 = vpack.c.bf16 %v1476_v0, %v1475_v63 }
 0x2f9   : > { %2033 = vmatpush3.bf16.msra.mxu0 %v2032_v2 }
 0x2fd   : > { %v1055_v4 = vpop.xlane.xlu1 %1054 }
 0x2fe   : > { %2124 = vrcp.f32 %v1055_v4  ;;  %v2056_v4 = vpack.c.bf16 %v1504_v3, %v1503_v1 }
 0x301   : > { %v2123_v6 = vpop.eup %2122  ;;  %v1216_v8 = vpop.xlane.xlu0 %1215 }
 0x302   : > { %v897_v9 = vmul.f32 %v2123_v6, %v2534_v15  ;;  %2126 = vrcp.f32 %v1216_v8  ;;  %v1522_v6 = vld [vmem:[%s2864_s2 + $0x1e8] sm:$0xff] }
 0x303   : > { %v2058_v8 = vpack.c.bf16 %v1522_v6, %v1521_v5 }
 0x304   : > { %v898_v11 = vsel %vm886_vm2, %v897_v9, 0.0  ;;  %1922 = vmatmul.mubr.msk.f32.vlgmr.msra.gmra.mrb[6].mxu1 %vm886_vm2, %v897_v9  ;;  %v1505_v9 = vld [vmem:[%s2864_s2 + $0x160] sm:$0xff] }
 0x305   : > { %1930 = vmatpush3.msra.mxu1 %v586_v10  ;;  %1931 = vmatprep.mubr.msk.f32.mxu1 %vm2227_vm1, %v2226_v7  ;;  %899 = vst [vmem:[%s2634_s15] sm:$0xff] %v898_v11  ;;  %v1377_v12 = vpop.xlane.xlu1 %1376  ;;  %v1506_v10 = vld [vmem:[%s2864_s2 + $0x168] sm:$0xff] }
 0x306   : > { %1939 = vmatprep.subr.mxu1 %v2226_v7  ;;  %2128 = vrcp.f32 %v1377_v12  ;;  %v2060_v11 = vpack.c.bf16 %v1506_v10, %v1505_v9  ;;  %v1523_v12 = vld [vmem:[%s2864_s2 + $0x1f0] sm:$0xff] }
 0x308   : > { %v2125_v18 = vpop.eup %2124 }
 0x309   : > { %v1057_v38 = vmul.f32 %v2125_v18, %v2538_v21  ;;  %v1494_v21 = vld [vmem:[%s2864_s2 + $0x108] sm:$0xff]  ;;  %v1524_v18 = vld [vmem:[%s2864_s2 + $0x1f8] sm:$0xff] }
 0x30a   : > { %v2036_v26 = vpack.c.bf16 %v1494_v21, %v1493_v20 }
 0x30b   : > { %v1058_v15 = vsel %vm886_vm2, %v1057_v38, 0.0  ;;  %1932 = vmatmul.mubr.msk.f32.vlgmr.msra.gmra.mrb[8].mxu1 %vm886_vm2, %v1057_v38  ;;  %v2062_v38 = vpack.c.bf16 %v1524_v18, %v1523_v12 }
 0x30c   : > { %v2127_v16 = vpop.eup %2126  ;;  %1940 = vmatpush3.msra.mxu1 %v2524_v50  ;;  %1941 = vmatprep.mubr.msk.f32.mxu1 %vm2227_vm1, %v2226_v7  ;;  %1813 = vst [vmem:[%s2634_s15 + $0x8] sm:$0xff] %v1058_v15  ;;  %v1511_v50 = vld [vmem:[%s2864_s2 + $0x190] sm:$0xff]  ;;  %v2064_v15 = vpack.c.bf16 %v1508_v14, %v1507_v13 }
 0x30d   : > { %v1218_v17 = vmul.f32 %v2127_v16, %v2542_v23  ;;  %1949 = vmatprep.subr.mxu1 %v2226_v7  ;;  %v1512_v23 = vld [vmem:[%s2864_s2 + $0x198] sm:$0xff] }
 0x30e   : > { %v2038_v28 = vpack.c.bf16 %v1512_v23, %v1511_v50 }
 0x30f   : > { %v1219_v22 = vsel %vm886_vm2, %v1218_v17, 0.0  ;;  %1942 = vmatmul.mubr.msk.f32.vlgmr.msra.gmra.mrb[10].mxu1 %vm886_vm2, %v1218_v17 }
 0x310   : > { %1950 = vmatpush3.msra.mxu1 %v2526_v54  ;;  %1951 = vmatprep.mubr.msk.f32.mxu1 %vm2227_vm1, %v2226_v7  ;;  %1815 = vst [vmem:[%s2634_s15 + $0x10] sm:$0xff] %v1219_v22  ;;  %v2129_v24 = vpop.eup %2128  ;;  %v1513_v54 = vld [vmem:[%s2864_s2 + $0x1a0] sm:$0xff]  ;;  %v1514_v7 = vld [vmem:[%s2864_s2 + $0x1a8] sm:$0xff] }
 0x311   : > { %2035 = vmatprep.subr.bf16.mxu1 %v2034_v19  ;;  %v1379_v27 = vmul.f32 %v2129_v24, %v2546_v25  ;;  %v2040_v25 = vpack.c.bf16 %v1496_v30, %v1495_v29  ;;  %v2042_v32 = vpack.c.bf16 %v1514_v7, %v1513_v54 }
 0x313   : > { %v1380_v31 = vsel %vm886_vm2, %v1379_v27, 0.0  ;;  %1952 = vmatmul.mubr.msk.f32.vlgmr.msra.gmra.mrb[12].mxu1 %vm886_vm2, %v1379_v27 }
 0x314   : > { %2037 = vmatpush3.bf16.msra.mxu1 %v2036_v26  ;;  %1817 = vst [vmem:[%s2634_s15 + $0x18] sm:$0xff] %v1380_v31  ;;  %s2136_s15 = scalar_lea.vmem %s2135_s10, 1024 }
 0x315   : > { %2039 = vmatprep.subr.bf16.mxu1 %v2038_v28  ;;  %p2138_p1 = scmp.lt.s32.totalorder %s2136_s15, %s2130_s29 }
 0x317   : > { %p2139_p2 = por %p2138_p1, %p2137_p0 }
 0x318   : > { %2041 = vmatpush3.bf16.msra.mxu1 %v2040_v25 }
 0x319   : > { %2043 = vmatprep.subr.bf16.mxu1 %v2042_v32  ;;  %p2140_p3 = pnand %p2139_p2, %p2133_p13 }
 0x31c   : > { %2045 = vmatpush3.bf16.msra.mxu1 %v2044_v37 }
 0x31d   : > { %2047 = vmatprep.subr.bf16.mxu1 %v2046_v39 }
 0x320   : > { %2049 = vmatpush3.bf16.msra.mxu1 %v2048_v42 }
 0x321   : > { %2051 = vmatprep.subr.bf16.mxu1 %v2050_v51 }
 0x324   : > { %2053 = vmatpush3.bf16.msra.mxu1 %v2052_v57 }
 0x325   : > { %2055 = vmatprep.subr.bf16.mxu1 %v2054_v62 }
 0x328   : > { %2057 = vmatpush3.bf16.msra.mxu1 %v2056_v4 }
 0x329   : > { %2059 = vmatprep.subr.bf16.mxu1 %v2058_v8 }
 0x32c   : > { %2061 = vmatpush3.bf16.msra.mxu1 %v2060_v11 }
 0x32d   : > { %2063 = vmatprep.subr.bf16.mxu1 %v2062_v38 }
 0x330   : > { %2065 = vmatpush3.bf16.msra.mxu1 %v2064_v15 }
 0x3d7   : > { %v969_v16 = vpop.f32.mrb[6].mxu1 }
 0x3d8   : > { %v1923_v17 = vpop.f32.mrb[7].mxu1 }
 0x3de   : > { %v1130_v19 = vpop.f32.mrb[8].mxu1 }
 0x3df   : > { %v1933_v20 = vpop.f32.mrb[9].mxu1  ;;  %1596 = vmatprep.mubr.f32.mxu0 %v1130_v19 }
 0x3e0   : > { %1597 = vmatmul.mubr.f32.vlgmr.msra.gmra.mrb[14].mxu0 %v969_v16 }
 0x3e2   : > { %v1291_v21 = vpop.f32.mrb[10].mxu1 }
 0x3e3   : > { %v1943_v22 = vpop.f32.mrb[11].mxu1 }
 0x3e6   : > { %v1452_v50 = vpop.f32.mrb[12].mxu1 }
 0x3e7   : > { %v1953_v23 = vpop.f32.mrb[13].mxu1  ;;  %1666 = vmatprep.mubr.f32.mxu1 %v1452_v50 }
 0x3e8   : > { %1667 = vmatmul.mubr.f32.vlgmr.msra.gmra.mrb[14].mxu1 %v1291_v21 }
 0x3e9   : > { %2143 = shalt.err (!%p2140_p3)
}
 0x3ea   : > { %s2144_s11 = scalar_lea.hbm %s2784_s26, 512  ;;  %s2148_s17 = scalar_lea.hbm %s2868_s6, 1024 }
 0x3eb   : > { %p2145_p4 = scmp.ne.s32.totalorder %s2784_s26, %s2144_s11  ;;  %p2149_p9 = scmp.lt.u32.totalorder %s2784_s26, %s2868_s6 }
 0x3ec   : > { %p2150_p10 = scmp.lt.u32.totalorder %s2148_s17, %s2144_s11  ;;  %p2152_p12 = scmp.lt.u32.totalorder %s2144_s11, %s2784_s26 }
 0x3ed   : > { %p2146_p7 = pnand %p2145_p4, %p2305_p5 }
 0x3ee   : > { %p2151_p11 = por %p2150_p10, %p2149_p9 }
 0x3ef   : > { %p2147_p8 = pneg %p2146_p7 }
 0x3f0   : > { %p2153_p13 = por %p2152_p12, %p2151_p11 }
 0x3f2   : > { %p2154_p0 = pnand %p2153_p13, %p2147_p8 }
 0x3f4   : > { %2157 = shalt.err (!%p2154_p0)
}
 0x3f5   : > { %s2229_s12 = smov 128   ;;  %s2230_s29 = smov 8   ;;  %v1819_v28 = vld [vmem:[%s2866_s4] ss:$0 sm:$0xff] }
 0x3f6   : > { %2067 = dma.vmem_to_hbm [thread:$0]  (%p2305_p5), %s2779_s18, 512, %s2784_s26, %s1679_s28, %s2229_s12, %s2229_s12, %s2230_s29  }
 0x3f7   : > { %s1803_s9 = sshll.u32 %s2624_s13, 3  ;;  %s1822_s11 = sshll.u32 %s2288_s25, 7 }
 0x3f8   : > { %s246_s14 = scalar_lea.vmem [#allocation4], %s1803_s9  ;;  %s2818_s26 = scalar_lea.hbm %s2867_s5, %s1822_s11 }
 0x3f9   : > { %s1692_s16 = sshll.u32 %s246_s14, 4  ;;  %s1674_s28 = scalar_lea.sflag [#allocation5], %s2624_s13  ;;  %s2820_s16 = int_to_ptr.vmem [resolvable:$true] %s1692_s16 }
 0x3fa   : > { %s2158_s19 = scalar_lea.vmem %s2820_s16, 128  ;;  %s2231_s25 = smov [#allocation4]  }
 0x3fb   : > { %p2159_p1 = scmp.ne.s32.totalorder %s2820_s16, %s2158_s19  ;;  %s2162_s20 = sshll.u32 %s2231_s25, 4  ;;  %s2163_s20 = int_to_ptr.vmem [resolvable:$false] %s2162_s20 }
 0x3fc   : > { %s2164_s12 = scalar_lea.vmem %s2163_s20, 256  ;;  %p2165_p4 = scmp.lt.s32.totalorder %s2820_s16, %s2163_s20 }
 0x3fd   : > { %p2160_p2 = pnand %p2159_p1, %p2305_p5  ;;  %p2166_p7 = scmp.lt.s32.totalorder %s2164_s12, %s2158_s19 }
 0x3ff   : > { %p2161_p3 = pneg %p2160_p2  ;;  %p2167_p8 = por %p2166_p7, %p2165_p4 }
 0x401   : > { %p2168_p9 = pnand %p2167_p8, %p2161_p3 }
 0x4b3   : > { %v1876_v24 = vpop.f32.mrb[14].mxu0 }
 0x4b4   : > { %v1877_v26 = vpop.f32.mrb[15].mxu0 }
 0x4b5   : > { %v1878_v27 = vadd.f32 %v1877_v26, %v1876_v24 }
 0x4b7   : > { %v1599_v54 = vadd.f32 %v1878_v27, %v1819_v28 }
 0x4bb   : > { %v1911_v29 = vpop.f32.mrb[14].mxu1 }
 0x4bc   : > { %v1912_v30 = vpop.f32.mrb[15].mxu1 }
 0x4bd   : > { %v1913_v7 = vadd.f32 %v1912_v30, %v1911_v29 }
 0x4bf   : > { %v1669_v31 = vadd.f32 %v1913_v7, %v1599_v54 }
 0x4c1   : > { %1672 = vst.msk [vmem:[%s246_s14] sm:$0xff] %vm371_vm0, %v1669_v31 }
 0x4c2   : > { %2171 = shalt.err (!%p2168_p9)
}
 0x4c3   : > { %s2172_s13 = scalar_lea.hbm %s2818_s26, 128  ;;  %s2176_s10 = scalar_lea.hbm %s2867_s5, 256 }
 0x4c4   : > { %p2173_p10 = scmp.ne.s32.totalorder %s2818_s26, %s2172_s13  ;;  %p2177_p13 = scmp.lt.u32.totalorder %s2818_s26, %s2867_s5 }
 0x4c5   : > { %p2178_p0 = scmp.lt.u32.totalorder %s2176_s10, %s2172_s13  ;;  %p2180_p2 = scmp.lt.u32.totalorder %s2172_s13, %s2818_s26 }
 0x4c6   : > { %p2174_p11 = pnand %p2173_p10, %p2305_p5 }
 0x4c7   : > { %p2179_p1 = por %p2178_p0, %p2177_p13 }
 0x4c8   : > { %p2175_p12 = pneg %p2174_p11 }
 0x4c9   : > { %p2181_p3 = por %p2180_p2, %p2179_p1 }
 0x4cb   : > { %p2182_p4 = pnand %p2181_p3, %p2175_p12 }
 0x4cd   : > { %2185 = shalt.err (!%p2182_p4)
}
 0x4ce   : > { %2066 = dma.vmem_to_hbm [thread:$0]  (%p2305_p5), %s2820_s16, 128, %s2818_s26, %s1674_s28  }
 0x4cf PF: > { %p2077_p7 = scmp.ge.s32.totalorder %s2224_s24, 2  ;;  %s1720_s14 = sand.u32 1, %s2212_s21  }
 0x4d0   : > { %s1721_s17 = scalar_lea.sflag [#allocation5], %s1720_s14 }
 0x4d1   : > { %p2071_p8 = pnand %p2077_p7, %p2309_p6 }
 0x4d3   : > { %2203 = dma.done.wait (!%p2071_p8), %s1721_s17, 128  }
 0x4d4   : > { %2205 = vsyncadd (!%p2071_p8), %s1721_s17, 4294967168  ;;  %s1730_s18 = scalar_lea.sflag [#allocation7], %s1720_s14 }
 0x4d5   : > { %2207 = dma.done.wait (!%p2071_p8), %s1730_s18, 512  }
 0x4d6   : > { %2209 = vsyncadd (!%p2071_p8), %s1730_s18, 4294966784  ;;  %p20_p5 = scmp.ge.s32.totalorder %s2292_s27, 4   ;;  %s2871_s21 = smov %s2216_s22 }
 0x4d7   : > { %s2872_s22 = smov %s2220_s23  ;;  %s2873_s23 = smov %s2303_s30 }
 0x4d8   : > { %s2874_s24 = smov %s2292_s27  ;;  %22 = sbr.rel (!%p20_p5) target bundleno = 5 (0x5), region = 95 }
 0x4df   :  { %1735 = vsyncpa [#allocation5], 1 }
 0x4e0   :  { %1737 = vsyncpa [#allocation5 + $0x1], 1 }
 0x4e1   :  { %1738 = vsyncpa [#allocation7], 1 }
 0x4e2   :  { %1740 = vsyncpa [#allocation7 + $0x1], 1 }

</bundles_post_ra>
